<compile_context>
chip_gen: v7x
topology: tpu7x:2x2x1
jax: 0.10.0
libtpu: 0.0.40
codegen_flags: <defaults>
</compile_context>

<pallas_src>
import functools

import jax
import jax.numpy as jnp
from jax.experimental import pallas as pl
from jax.experimental.pallas import tpu as pltpu


def _round_up(x, m):
    return ((x + m - 1) // m) * m


def _net3dseg_kernel(xT_ref, w1_ref, b1_ref, w2_ref, b2_ref, wc_ref, bc_ref,
                     out_ref):
    """One tile of points (feature-major): backbone MLP + fused dual heads.

    xT_ref : (c_in, tile_n)             bf16  point features, transposed
    w1_ref : (m, c_in)                  bf16  backbone layer 1 (PyTorch (out,in))
    b1_ref : (m, 1)                     f32
    w2_ref : (c_out, m)                 bf16  backbone layer 2
    b2_ref : (c_out, 1)                 f32
    wc_ref : (2*n_cls, c_out)           bf16  cls_head1 & cls_head2, stacked
    bc_ref : (2*n_cls, 1)               f32
    out_ref: (c_out + 2*n_cls, tile_n)  bf16  [feats ; logits1 ; logits2] slab
    """
    x_t = xT_ref[...]                                              # bf16

    # Backbone surrogate (per-point path of UNetSCN): two point-wise linears.
    # MXU utilization is irrelevant here (kernel is HBM-bound); f32 accum.
    h = jnp.dot(w1_ref[...], x_t, preferred_element_type=jnp.float32)
    h = jnp.maximum(h + b1_ref[...], 0.0)                          # (m, tile) f32

    feats = jnp.dot(w2_ref[...], h.astype(w2_ref.dtype),
                    preferred_element_type=jnp.float32)
    feats = jnp.maximum(feats + b2_ref[...], 0.0)                  # (c_out, tile) f32

    # Fused cls_head1 + cls_head2: one MXU push.
    logits = jnp.dot(wc_ref[...], feats.astype(wc_ref.dtype),
                     preferred_element_type=jnp.float32) + bc_ref[...]

    # Two sublane-aligned sliced stores (c_out = 16 is a multiple of the bf16
    # sublane tile), no concatenate temporary.
    c_out = feats.shape[0]
    out_ref[:c_out, :] = feats.astype(out_ref.dtype)
    out_ref[c_out:, :] = logits.astype(out_ref.dtype)


@functools.partial(jax.jit, static_argnames=("tile_n",))
def net3dseg_forward(x, params, tile_n=16384):
    """x: (N, in_channels) point features (f32).

    Returns (feats, {"seg_logit": ..., "seg_logit2": ...}) in the PyTorch
    (N, C) layout (bf16), matching Net3DSeg.forward semantics
    (backbone feats + dual classification heads).
    """
    n, c_in = x.shape
    w1, b1, w2, b2, wc1, bc1, wc2, bc2 = params
    m = w1.shape[0]
    c_out = w2.shape[0]
    n_cls = wc1.shape[0]

    # Point tile: lane-dense (multiple of 128), large to amortize per-step
    # pipeline overhead, clamped so num_tiles >= 2 (keeps both v7x TCs busy).
    tile = max(128, min(tile_n, _round_up(pl.cdiv(n, 2), 128)))
    num_tiles = pl.cdiv(n, tile)
    n_pad = num_tiles * tile

    # Feature-major inputs: lanes = points.  bf16 halves HBM traffic for the
    # N-proportional arrays and feeds bf16 MXU matmuls; f32 accumulation.
    x_t = jnp.pad(x.astype(jnp.bfloat16).T, ((0, 0), (0, n_pad - n)))
    w1b = w1.astype(jnp.bfloat16)
    w2b = w2.astype(jnp.bfloat16)
    wcb = jnp.concatenate([wc1, wc2], axis=0).astype(jnp.bfloat16)  # (2*n_cls, c_out)
    b1c = b1.reshape(m, 1).astype(jnp.float32)
    b2c = b2.reshape(c_out, 1).astype(jnp.float32)
    bcc = jnp.concatenate([bc1, bc2], axis=0).reshape(2 * n_cls, 1).astype(jnp.float32)

    rows_out = c_out + 2 * n_cls

    def full_spec(r, c):
        # Constant blocks (index_map always (0, 0)); a few KB each, so the
        # default double-buffering costs negligible VMEM.
        return pl.BlockSpec((r, c), lambda i: (0, 0))

    out_t = pl.pallas_call(
        _net3dseg_kernel,
        out_shape=jax.ShapeDtypeStruct((rows_out, n_pad), jnp.bfloat16),
        grid_spec=pltpu.PrefetchScalarGridSpec(
            num_scalar_prefetch=0,
            grid=(num_tiles,),
            in_specs=[
                pl.BlockSpec((c_in, tile), lambda i: (0, i)),   # x^T tile
                full_spec(m, c_in),                             # w1
                full_spec(m, 1),                                # b1
                full_spec(c_out, m),                            # w2
                full_spec(c_out, 1),                            # b2
                full_spec(2 * n_cls, c_out),                    # [wc1; wc2]
                full_spec(2 * n_cls, 1),                        # [bc1; bc2]
            ],
            out_specs=pl.BlockSpec((rows_out, tile), lambda i: (0, i)),
        ),
        # VMEM per tile (<2 MiB double-buffered even at tile_n=32768) is well
        # under the scoped default; no vmem_limit_bytes needed, even on v7x.
        compiler_params=pltpu.CompilerParams(
            dimension_semantics=("parallel",),
        ),
    )(x_t, w1b, b1c, w2b, b2c, wcb, bcc)

    # One transpose of the single bf16 slab (instead of three f32
    # slice+transposes), then cheap slices back to the PyTorch (N, C) layout.
    out_nt = out_t.T                                   # (n_pad, rows_out) bf16
    feats = out_nt[:n, :c_out]
    logit1 = out_nt[:n, c_out:c_out + n_cls]
    logit2 = out_nt[:n, c_out + n_cls:]
    return feats, {"seg_logit": logit1, "seg_logit2": logit2}


def init_params(key, in_channels, m, out_channels, num_classes):
    """Deterministic synthetic parameters in PyTorch nn.Linear convention:
    weight (out_features, in_features), bias (out_features,)."""
    ks = jax.random.split(key, 8)
    scale = 0.1
    w1 = scale * jax.random.normal(ks[0], (m, in_channels), jnp.float32)
    b1 = scale * jax.random.normal(ks[1], (m,), jnp.float32)
    w2 = scale * jax.random.normal(ks[2], (out_channels, m), jnp.float32)
    b2 = scale * jax.random.normal(ks[3], (out_channels,), jnp.float32)
    wc1 = scale * jax.random.normal(ks[4], (num_classes, out_channels), jnp.float32)
    bc1 = scale * jax.random.normal(ks[5], (num_classes,), jnp.float32)
    wc2 = scale * jax.random.normal(ks[6], (num_classes, out_channels), jnp.float32)
    bc2 = scale * jax.random.normal(ks[7], (num_classes,), jnp.float32)
    return (w1, b1, w2, b2, wc1, bc1, wc2, bc2)


def reference_forward(x, params):
    """Pure-JAX reference mirroring the kernel's precision regime (bf16 MXU
    inputs, f32 accumulation, f32 bias/ReLU); outputs kept in f32 — the kernel
    additionally rounds its outputs to bf16."""
    w1, b1, w2, b2, wc1, bc1, wc2, bc2 = params
    bf = jnp.bfloat16
    h = jnp.dot(x.astype(bf), w1.astype(bf).T,
                preferred_element_type=jnp.float32) + b1
    h = jnp.maximum(h, 0.0)
    feats = jnp.dot(h.astype(bf), w2.astype(bf).T,
                    preferred_element_type=jnp.float32) + b2
    feats = jnp.maximum(feats, 0.0)
    l1 = jnp.dot(feats.astype(bf), wc1.astype(bf).T,
                 preferred_element_type=jnp.float32) + bc1
    l2 = jnp.dot(feats.astype(bf), wc2.astype(bf).T,
                 preferred_element_type=jnp.float32) + bc2
    return feats, l1, l2


if __name__ == "__main__":
    key = jax.random.PRNGKey(0)
    k_x, k_p = jax.random.split(key)

    # Small shapes consistent with xmuda's UNetSCN usage:
    #   in_channels=4 point features, m=16, out_channels=16, num_classes=8.
    # N=8000 is not a tile multiple (exercises the ragged-N padding path) and,
    # with the >=2-tile clamp, gives a 2-step parallel grid (both v7x TCs).
    N, IN_C, M, OUT_C, NUM_CLASSES = 8000, 4, 16, 16, 8

    x = jax.random.normal(k_x, (N, IN_C), jnp.float32)
    params = init_params(k_p, IN_C, M, OUT_C, NUM_CLASSES)

    feats, preds = net3dseg_forward(x, params)
    jax.block_until_ready((feats, preds))

    # Sanity check against the pure-JAX reference (same bf16/f32 precision
    # regime; kernel outputs are bf16-rounded, so tolerances are bf16-level).
    r_feats, r_l1, r_l2 = reference_forward(x, params)
    assert feats.shape == (N, OUT_C)
    assert preds["seg_logit"].shape == (N, NUM_CLASSES)
    assert preds["seg_logit2"].shape == (N, NUM_CLASSES)
    assert feats.dtype == jnp.bfloat16
    assert jnp.allclose(feats.astype(jnp.float32), r_feats, atol=1e-2, rtol=2e-2)
    assert jnp.allclose(preds["seg_logit"].astype(jnp.float32), r_l1,
                        atol=1e-2, rtol=2e-2)
    assert jnp.allclose(preds["seg_logit2"].astype(jnp.float32), r_l2,
                        atol=1e-2, rtol=2e-2)

    print("KERNEL_OK")
</pallas_src>

<mosaic_0001>
module attributes {stable_mosaic.version = 11 : i64} {
  func.func @_net3dseg_kernel(%arg0: i32, %arg1: memref<4x4096xbf16, #tpu.memory_space<vmem>>, %arg2: memref<16x4xbf16, #tpu.memory_space<vmem>>, %arg3: memref<16x1xf32, #tpu.memory_space<vmem>>, %arg4: memref<16x16xbf16, #tpu.memory_space<vmem>>, %arg5: memref<16x1xf32, #tpu.memory_space<vmem>>, %arg6: memref<16x16xbf16, #tpu.memory_space<vmem>>, %arg7: memref<16x1xf32, #tpu.memory_space<vmem>>, %arg8: memref<32x4096xbf16, #tpu.memory_space<vmem>>) attributes {dimension_semantics = [#tpu.dimension_semantics<parallel>], iteration_bounds = array<i64: 2>, scalar_prefetch = 0 : i64, scratch_operands = 0 : i64, tpu.core_type = #tpu.core_type<tc>, window_params = [{transform_indices = @transform_0, window_bounds = array<i64: 4, 4096>}, {pipeline_mode = #tpu.pipeline_mode<synchronous>, transform_indices = @transform_1, window_bounds = array<i64: 16, 4>}, {pipeline_mode = #tpu.pipeline_mode<synchronous>, transform_indices = @transform_2, window_bounds = array<i64: 16, 1>}, {pipeline_mode = #tpu.pipeline_mode<synchronous>, transform_indices = @transform_3, window_bounds = array<i64: 16, 16>}, {pipeline_mode = #tpu.pipeline_mode<synchronous>, transform_indices = @transform_4, window_bounds = array<i64: 16, 1>}, {pipeline_mode = #tpu.pipeline_mode<synchronous>, transform_indices = @transform_5, window_bounds = array<i64: 16, 16>}, {pipeline_mode = #tpu.pipeline_mode<synchronous>, transform_indices = @transform_6, window_bounds = array<i64: 16, 1>}, {transform_indices = @transform_7, window_bounds = array<i64: 32, 4096>}]} {
    %c0 = arith.constant 0 : index
    %c0_0 = arith.constant 0 : index
    %0 = vector.load %arg1[%c0, %c0_0] : memref<4x4096xbf16, #tpu.memory_space<vmem>>, vector<4x4096xbf16>
    %c0_1 = arith.constant 0 : index
    %c0_2 = arith.constant 0 : index
    %1 = vector.load %arg2[%c0_1, %c0_2] : memref<16x4xbf16, #tpu.memory_space<vmem>>, vector<16x4xbf16>
    %cst = arith.constant dense<0.000000e+00> : vector<16x4096xf32>
    %2 = tpu.matmul %1, %0, %cst {dimension_numbers = #tpu.dot_dimension_numbers<[1], [0], [0], [1], [0, 0, 1, 1], [], []>} : vector<16x4xbf16>, vector<4x4096xbf16>, vector<16x4096xf32> -> vector<16x4096xf32>
    %c0_3 = arith.constant 0 : index
    %c0_4 = arith.constant 0 : index
    %3 = vector.load %arg3[%c0_3, %c0_4] : memref<16x1xf32, #tpu.memory_space<vmem>>, vector<16x1xf32>
    %4 = vector.broadcast %3 : vector<16x1xf32> to vector<16x4096xf32>
    %5 = arith.addf %2, %4 : vector<16x4096xf32>
    %cst_5 = arith.constant 0.000000e+00 : f32
    %6 = vector.broadcast %cst_5 : f32 to vector<16x4096xf32>
    %7 = arith.maximumf %5, %6 : vector<16x4096xf32>
    %c0_6 = arith.constant 0 : index
    %c0_7 = arith.constant 0 : index
    %8 = vector.load %arg4[%c0_6, %c0_7] : memref<16x16xbf16, #tpu.memory_space<vmem>>, vector<16x16xbf16>
    %9 = arith.truncf %7 : vector<16x4096xf32> to vector<16x4096xbf16>
    %cst_8 = arith.constant dense<0.000000e+00> : vector<16x4096xf32>
    %10 = tpu.matmul %8, %9, %cst_8 {dimension_numbers = #tpu.dot_dimension_numbers<[1], [0], [0], [1], [0, 0, 1, 1], [], []>} : vector<16x16xbf16>, vector<16x4096xbf16>, vector<16x4096xf32> -> vector<16x4096xf32>
    %c0_9 = arith.constant 0 : index
    %c0_10 = arith.constant 0 : index
    %11 = vector.load %arg5[%c0_9, %c0_10] : memref<16x1xf32, #tpu.memory_space<vmem>>, vector<16x1xf32>
    %12 = vector.broadcast %11 : vector<16x1xf32> to vector<16x4096xf32>
    %13 = arith.addf %10, %12 : vector<16x4096xf32>
    %cst_11 = arith.constant 0.000000e+00 : f32
    %14 = vector.broadcast %cst_11 : f32 to vector<16x4096xf32>
    %15 = arith.maximumf %13, %14 : vector<16x4096xf32>
    %c0_12 = arith.constant 0 : index
    %c0_13 = arith.constant 0 : index
    %16 = vector.load %arg6[%c0_12, %c0_13] : memref<16x16xbf16, #tpu.memory_space<vmem>>, vector<16x16xbf16>
    %17 = arith.truncf %15 : vector<16x4096xf32> to vector<16x4096xbf16>
    %cst_14 = arith.constant dense<0.000000e+00> : vector<16x4096xf32>
    %18 = tpu.matmul %16, %17, %cst_14 {dimension_numbers = #tpu.dot_dimension_numbers<[1], [0], [0], [1], [0, 0, 1, 1], [], []>} : vector<16x16xbf16>, vector<16x4096xbf16>, vector<16x4096xf32> -> vector<16x4096xf32>
    %c0_15 = arith.constant 0 : index
    %c0_16 = arith.constant 0 : index
    %19 = vector.load %arg7[%c0_15, %c0_16] : memref<16x1xf32, #tpu.memory_space<vmem>>, vector<16x1xf32>
    %20 = vector.broadcast %19 : vector<16x1xf32> to vector<16x4096xf32>
    %21 = arith.addf %18, %20 : vector<16x4096xf32>
    %22 = arith.truncf %15 : vector<16x4096xf32> to vector<16x4096xbf16>
    %c0_17 = arith.constant 0 : index
    %c0_18 = arith.constant 0 : index
    %23 = vector.load %arg8[%c0_17, %c0_18] : memref<32x4096xbf16, #tpu.memory_space<vmem>>, vector<16x4096xbf16>
    tpu.vector_store %arg8[%c0_17, %c0_18], %22 {strides = array<i32>} : memref<32x4096xbf16, #tpu.memory_space<vmem>>, vector<16x4096xbf16>,
    %24 = arith.truncf %21 : vector<16x4096xf32> to vector<16x4096xbf16>
    %c16 = arith.constant 16 : index
    %c0_19 = arith.constant 0 : index
    %25 = vector.load %arg8[%c16, %c0_19] : memref<32x4096xbf16, #tpu.memory_space<vmem>>, vector<16x4096xbf16>
    tpu.vector_store %arg8[%c16, %c0_19], %24 {strides = array<i32>} : memref<32x4096xbf16, #tpu.memory_space<vmem>>, vector<16x4096xbf16>,
    return
  }
  func.func @transform_0(%arg0: i32) -> (i32, i32) {
    %c0_i32 = arith.constant 0 : i32
    %c0_i32_0 = arith.constant 0 : i32
    return %c0_i32, %arg0 : i32, i32
  }
  func.func @transform_1(%arg0: i32) -> (i32, i32) {
    %c0_i32 = arith.constant 0 : i32
    %c0_i32_0 = arith.constant 0 : i32
    %c0_i32_1 = arith.constant 0 : i32
    return %c0_i32, %c0_i32_0 : i32, i32
  }
  func.func @transform_2(%arg0: i32) -> (i32, i32) {
    %c0_i32 = arith.constant 0 : i32
    %c0_i32_0 = arith.constant 0 : i32
    %c0_i32_1 = arith.constant 0 : i32
    return %c0_i32, %c0_i32_0 : i32, i32
  }
  func.func @transform_3(%arg0: i32) -> (i32, i32) {
    %c0_i32 = arith.constant 0 : i32
    %c0_i32_0 = arith.constant 0 : i32
    %c0_i32_1 = arith.constant 0 : i32
    return %c0_i32, %c0_i32_0 : i32, i32
  }
  func.func @transform_4(%arg0: i32) -> (i32, i32) {
    %c0_i32 = arith.constant 0 : i32
    %c0_i32_0 = arith.constant 0 : i32
    %c0_i32_1 = arith.constant 0 : i32
    return %c0_i32, %c0_i32_0 : i32, i32
  }
  func.func @transform_5(%arg0: i32) -> (i32, i32) {
    %c0_i32 = arith.constant 0 : i32
    %c0_i32_0 = arith.constant 0 : i32
    %c0_i32_1 = arith.constant 0 : i32
    return %c0_i32, %c0_i32_0 : i32, i32
  }
  func.func @transform_6(%arg0: i32) -> (i32, i32) {
    %c0_i32 = arith.constant 0 : i32
    %c0_i32_0 = arith.constant 0 : i32
    %c0_i32_1 = arith.constant 0 : i32
    return %c0_i32, %c0_i32_0 : i32, i32
  }
  func.func @transform_7(%arg0: i32) -> (i32, i32) {
    %c0_i32 = arith.constant 0 : i32
    %c0_i32_0 = arith.constant 0 : i32
    return %c0_i32, %arg0 : i32, i32
  }
}

</mosaic_0001>

<bundles_post_ra>
// kernel: net3dseg_forward.1
= control target key start
LH: loop header
LB: loop body
LE: loop exit
PB: predicated region body
PF: predicated region fallthrough
CT: control target
= control target key end

     0   :  { %s3783_s24 = smov 0   ;;  %s3785_s25 = smov 0   ;;  %s4472_s0 = inlined_call_operand.vmem [shape: bf16[4,8192], index: 0, kind: input, shape index: {}]   ;;  %s4473_s1 = inlined_call_operand.vmem [shape: bf16[16,4], index: 1, kind: input, shape index: {}]   ;;  %s4474_s2 = inlined_call_operand.vmem [shape: f32[16,1], index: 2, kind: input, shape index: {}]   ;;  %s4475_s3 = inlined_call_operand.vmem [shape: bf16[16,16], index: 3, kind: input, shape index: {}]   ;;  %s4476_s4 = inlined_call_operand.vmem [shape: f32[16,1], index: 4, kind: input, shape index: {}]   ;;  %s4477_s5 = inlined_call_operand.vmem [shape: bf16[16,16], index: 5, kind: input, shape index: {}]   ;;  %s4478_s6 = inlined_call_operand.vmem [shape: f32[16,1], index: 6, kind: input, shape index: {}]   ;;  %s4479_s7 = inlined_call_operand.vmem [shape: bf16[32,8192], index: 7, kind: output, shape index: {}]  }
   0x1   :  { %s3787_s26 = smov 0  }
   0x2 LB: > { %s3796_s27 = sadd.s32 4294967295, %s3739_s26   ;;  %s3798_s28 = sadd.s32 1, %s3739_s26   ;;  %s3739_s26 = sphi %s3787_s26, %s4483_s26   ;;  %s3735_s25 = sphi %s3785_s25, %s4482_s25   ;;  %s3731_s24 = sphi %s3783_s24, %s4481_s24  }
   0x3   : > { %s173_s29 = ssub.s32 %s3739_s26, %s3798_s28  ;;  %s176_s30 = sadd.s32 1, %s3735_s25 }
   0x4   : > { %p174_p0 = scmp.eq.s32.totalorder %s173_s29, 0  ;;  %p186_p1 = scmp.ne.s32.totalorder %s3735_s25, %s3731_s24 }
   0x5   : > { %p187_p2 = scmp.eq.s32.totalorder %s3796_s27, 1  ;;  %p3473_p3 = scmp.ge.s32.totalorder %s3739_s26, 1 }
   0x6   : > { %s3806_s8 = scalar_select %p174_p0, %s3735_s25, %s176_s30  }
   0x7   : > { %p3808_p4 = por %p187_p2, %p186_p1  ;;  %p238_p5 = scmp.lt.s32.totalorder %s3739_s26, 3 }
   0x9   : > { %p239_p6 = pnand %p3473_p3, %p238_p5 }
   0xa   : > { %s3475_s10 = sshll.u32 (!%p239_p6), %s3796_s27, 5  ;;  %v316_v0 = vlaneseq (!%p239_p6)  ;;  %v3741_v1 = vmov (!%p239_p6), 1983009808   ;;  %v3742_v3 = vmov (!%p239_p6), 0   ;;  %v287_v5 = vld [vmem:[%s4474_s2] sm:$0xff] (!%p239_p6)  ;;  %v288_v7 = vld [vmem:[%s4474_s2 + $0x8] sm:$0xff] (!%p239_p6) }
   0xb   : > { %242 = sbr.rel (%p239_p6) target bundleno = 771 (0x303), region = 48  ;;  %p270_p7 = scmp.lt.s32.totalorder (!%p239_p6), %s3475_s10, 63  ;;  %v314_v2 = vunpack.c.l.s4 (!%p239_p6), %v3741_v1  ;;  %581 = vmatprep.mubr.bf16.mxu0 (!%p239_p6), %v3742_v3  ;;  %624 = vmatprep.mubr.bf16.mxu1 (!%p239_p6), %v3742_v3  ;;  %vm452_vm0 = vcmask (!%p239_p6), 1041408   ;;  %v2142_v16 = vld [vmem:[%s4478_s6] sm:$0xff] (!%p239_p6)  ;;  %vm448_vm1 = vcmask (!%p239_p6), 31744   ;;  %vm1352_vm2 = vcmask (!%p239_p6), 130048  }
   0xc   : > { %v317_v4 = vshrl.u32 (!%p239_p6), %v316_v0, 7  ;;  %3704 = vset.pattern.permute.xlu0 (!%p239_p6), %v3742_v3  ;;  %3705 = vset.pattern.permute.xlu1 (!%p239_p6), %v3742_v3  ;;  %v3847_v26 = vld [vmem:[%s4473_s1] sm:$0xff] (!%p239_p6)   ;;  %s266_s14 = sand.u32 (!%p239_p6), 1, %s3731_s24  }
   0xd   : > { %v315_v6 = vunpack.c.0.s8 (!%p239_p6), %v314_v2  ;;  %291 = vperm.xlu0 (!%p239_p6), %3704, %v287_v5  }
   0xf   : > { %v3823_v8 = vsub.s32 (!%p239_p6), %v315_v6, %v317_v4 }
  0x11   : > { %296 = vperm.xlu0 (!%p239_p6), %3704, %v288_v7  }
  0x12   : > { %s4485_s10 = smov (!%p270_p7, %s3475_s10), 63 }
  0x13   : > { %s3476_s15 = sshll.u32 %s4485_s10, 1 }
  0x14   : > { %s3828_s18 = scalar_lea.vmem %s4472_s0, %s3476_s15  ;;  %s3474_s15 = sshll.u32 %s266_s14, 9 }
  0x15   : > { %v277_v9 = vld [vmem:[%s3828_s18] sm:$0xff]  ;;  %v278_v10 = vld [vmem:[%s3828_s18 + $0x8] sm:$0xff]  ;;  %v279_v11 = vld [vmem:[%s3828_s18 + $0x10] sm:$0xff]  ;;  %2146 = vperm.xlu0 %3704, %v2142_v16   ;;  %s4085_s24 = scalar_lea.vmem [#allocation2], %s3474_s15 }
  0x16   : > { %v319_v12 = vrot.slane %v277_v9, %v3823_v8  ;;  %v312_v13 = vcombine.high %v277_v9, %v277_v9  ;;  %v336_v14 = vrot.slane %v278_v10, %v3823_v8  ;;  %v329_v15 = vcombine.high %v278_v10, %v278_v10  ;;  %v280_v29 = vld [vmem:[%s3828_s18 + $0x18] sm:$0xff]  ;;  %v281_v37 = vld [vmem:[%s3828_s18 + $0x20] sm:$0xff]  ;;  %v282_v45 = vld [vmem:[%s3828_s18 + $0x28] sm:$0xff] }
  0x17   : > { %v353_v17 = vrot.slane %v279_v11, %v3823_v8  ;;  %v346_v18 = vcombine.high %v279_v11, %v279_v11  ;;  %v363_v34 = vcombine.high %v280_v29, %v280_v29  ;;  %v370_v35 = vrot.slane %v280_v29, %v3823_v8  ;;  %v283_v53 = vld [vmem:[%s3828_s18 + $0x30] sm:$0xff]  ;;  %v284_v61 = vld [vmem:[%s3828_s18 + $0x38] sm:$0xff]  ;;  %s3677_s18 = sshll.u32 (%p3808_p4), %s3796_s27, 7 }
  0x18   : > { %v327_v19 = vcombine.high %v319_v12, %v319_v12  ;;  %v454_v20 = vsel %vm452_vm0, %v319_v12, 0  ;;  %v326_v21 = vrot.slane %v312_v13, %v3823_v8  ;;  %v344_v22 = vcombine.high %v336_v14, %v336_v14  ;;  %v1335_v12 = vld [vmem:[%s4476_s4] sm:$0xff]  ;;  %v1336_v13 = vld [vmem:[%s4476_s4 + $0x8] sm:$0xff]  ;;  %s4335_s21 = scalar_lea.vmem (%p3808_p4), %s4479_s7, %s3677_s18 }
  0x19   : > { %v343_v23 = vrot.slane %v329_v15, %v3823_v8  ;;  %v360_v27 = vrot.slane %v346_v18, %v3823_v8  ;;  %v466_v30 = vsel %vm452_vm0, %v336_v14, 0  ;;  %v361_v31 = vcombine.high %v353_v17, %v353_v17  ;;  %1339 = vperm.xlu1 %3705, %v1335_v12   ;;  %v2143_v14 = vld [vmem:[%s4478_s6 + $0x8] sm:$0xff] }
  0x1a   : > { %3478 = vmatprep.subr.msk.bf16.mxu0 %vm452_vm0, %v327_v19  ;;  %v328_v24 = vcombine.high %v326_v21, %v326_v21  ;;  %v460_v25 = vsel %vm452_vm0, %v326_v21, 0  ;;  %v377_v36 = vrot.slane %v363_v34, %v3823_v8  ;;  %v478_v38 = vsel %vm452_vm0, %v353_v17, 0 }
  0x1b   : > { %550 = vmatpush1.bf16.msra.mxu0 %v454_v20  ;;  %v345_v28 = vcombine.high %v343_v23, %v343_v23  ;;  %v472_v32 = vsel %vm452_vm0, %v343_v23, 0  ;;  %v362_v33 = vcombine.high %v360_v27, %v360_v27  ;;  %v378_v39 = vcombine.high %v370_v35, %v370_v35 }
  0x1c   : > { %3480 = vmatprep.subr.msk.bf16.mxu1 %vm452_vm0, %v328_v24  ;;  %3482 = vmatprep.subr.msk.bf16.mxu0 %vm452_vm0, %v344_v22  ;;  %v484_v40 = vsel %vm452_vm0, %v360_v27, 0  ;;  %v379_v41 = vcombine.high %v377_v36, %v377_v36  ;;  %v380_v42 = vcombine.high %v281_v37, %v281_v37  ;;  %v387_v43 = vrot.slane %v281_v37, %v3823_v8 }
  0x1d   : > { %593 = vmatpush1.bf16.msra.mxu1 %v460_v25  ;;  %v490_v46 = vsel %vm452_vm0, %v370_v35, 0  ;;  %v496_v48 = vsel %vm452_vm0, %v377_v36, 0  ;;  %v397_v50 = vcombine.high %v282_v45, %v282_v45  ;;  %v404_v51 = vrot.slane %v282_v45, %v3823_v8  ;;  %1344 = vperm.xlu1 %3705, %v1336_v13  }
  0x1e   : > { %3479 = vmatmul.mubr.msk.bf16.vlgmr.msra.gmra.mrb[0].mxu0 %vm448_vm1, %v3847_v26  ;;  %3484 = vmatprep.subr.msk.bf16.mxu1 %vm452_vm0, %v345_v28  ;;  %v394_v44 = vrot.slane %v380_v42, %v3823_v8  ;;  %v395_v47 = vcombine.high %v387_v43, %v387_v43  ;;  %v502_v54 = vsel %vm452_vm0, %v387_v43, 0  ;;  %v414_v58 = vcombine.high %v283_v53, %v283_v53 }
  0x1f   : > { %636 = vmatpush1.bf16.msra.mxu0 %v466_v30  ;;  %667 = vmatprep.mubr.bf16.mxu0 %v3742_v3  ;;  %v411_v52 = vrot.slane %v397_v50, %v3823_v8  ;;  %v412_v55 = vcombine.high %v404_v51, %v404_v51  ;;  %v421_v59 = vrot.slane %v283_v53, %v3823_v8  ;;  %v514_v62 = vsel %vm452_vm0, %v404_v51, 0  ;;  %v3968_v51 = vld [vmem:[%s4475_s3] sm:$0xff]  }
  0x20   : > { %3481 = vmatmul.mubr.msk.bf16.vlgmr.msra.gmra.mrb[0].mxu1 %vm448_vm1, %v3847_v26  ;;  %3486 = vmatprep.subr.msk.bf16.mxu0 %vm452_vm0, %v361_v31  ;;  %v396_v49 = vcombine.high %v394_v44, %v394_v44  ;;  %v508_v56 = vsel %vm452_vm0, %v394_v44, 0  ;;  %v428_v60 = vrot.slane %v414_v58, %v3823_v8  ;;  %v431_v2 = vcombine.high %v284_v61, %v284_v61 }
  0x21   : > { %679 = vmatpush1.bf16.msra.mxu1 %v472_v32  ;;  %710 = vmatprep.mubr.bf16.mxu1 %v3742_v3  ;;  %v413_v57 = vcombine.high %v411_v52, %v411_v52  ;;  %v429_v63 = vcombine.high %v421_v59, %v421_v59  ;;  %v520_v0 = vsel %vm452_vm0, %v411_v52, 0  ;;  %v438_v4 = vrot.slane %v284_v61, %v3823_v8 }
  0x22   : > { %3488 = vmatprep.subr.msk.bf16.mxu1 %vm452_vm0, %v362_v33  ;;  %v430_v1 = vcombine.high %v428_v60, %v428_v60  ;;  %v445_v5 = vrot.slane %v431_v2, %v3823_v8  ;;  %v526_v6 = vsel %vm452_vm0, %v421_v59, 0  ;;  %v532_v9 = vsel %vm452_vm0, %v428_v60, 0  ;;  %2151 = vperm.xlu1 %3705, %v2143_v14  }
  0x23   : > { %v446_v7 = vcombine.high %v438_v4, %v438_v4  ;;  %v538_v8 = vsel %vm452_vm0, %v438_v4, 0 }
  0x24   : > { %v447_v10 = vcombine.high %v445_v5, %v445_v5  ;;  %v544_v11 = vsel %vm452_vm0, %v445_v5, 0 }
  0x26   : > { %3483 = vmatmul.mubr.msk.bf16.vlgmr.msra.gmra.mrb[4].mxu0 %vm448_vm1, %v3847_v26 }
  0x27   : > { %722 = vmatpush1.bf16.msra.mxu0 %v478_v38  ;;  %753 = vmatprep.mubr.bf16.mxu0 %v3742_v3 }
  0x28   : > { %3485 = vmatmul.mubr.msk.bf16.vlgmr.msra.gmra.mrb[4].mxu1 %vm448_vm1, %v3847_v26  ;;  %3490 = vmatprep.subr.msk.bf16.mxu0 %vm452_vm0, %v378_v39 }
  0x29   : > { %765 = vmatpush1.bf16.msra.mxu1 %v484_v40  ;;  %796 = vmatprep.mubr.bf16.mxu1 %v3742_v3 }
  0x2a   : > { %3492 = vmatprep.subr.msk.bf16.mxu1 %vm452_vm0, %v379_v41 }
  0x2e   : > { %3487 = vmatmul.mubr.msk.bf16.vlgmr.msra.gmra.mrb[8].mxu0 %vm448_vm1, %v3847_v26 }
  0x2f   : > { %808 = vmatpush1.bf16.msra.mxu0 %v490_v46  ;;  %839 = vmatprep.mubr.bf16.mxu0 %v3742_v3 }
  0x30   : > { %3489 = vmatmul.mubr.msk.bf16.vlgmr.msra.gmra.mrb[8].mxu1 %vm448_vm1, %v3847_v26  ;;  %3494 = vmatprep.subr.msk.bf16.mxu0 %vm452_vm0, %v395_v47 }
  0x31   : > { %851 = vmatpush1.bf16.msra.mxu1 %v496_v48  ;;  %882 = vmatprep.mubr.bf16.mxu1 %v3742_v3 }
  0x32   : > { %3496 = vmatprep.subr.msk.bf16.mxu1 %vm452_vm0, %v396_v49 }
  0x36   : > { %3491 = vmatmul.mubr.msk.bf16.vlgmr.msra.gmra.mrb[12].mxu0 %vm448_vm1, %v3847_v26 }
  0x37   : > { %894 = vmatpush1.bf16.msra.mxu0 %v502_v54  ;;  %925 = vmatprep.mubr.bf16.mxu0 %v3742_v3 }
  0x38   : > { %3493 = vmatmul.mubr.msk.bf16.vlgmr.msra.gmra.mrb[12].mxu1 %vm448_vm1, %v3847_v26  ;;  %3498 = vmatprep.subr.msk.bf16.mxu0 %vm452_vm0, %v412_v55 }
  0x39   : > { %937 = vmatpush1.bf16.msra.mxu1 %v508_v56  ;;  %968 = vmatprep.mubr.bf16.mxu1 %v3742_v3 }
  0x3a   : > { %3500 = vmatprep.subr.msk.bf16.mxu1 %vm452_vm0, %v413_v57 }
  0x3e   : > { %3495 = vmatmul.mubr.msk.bf16.vlgmr.msra.gmra.mrb[16].mxu0 %vm448_vm1, %v3847_v26 }
  0x3f   : > { %980 = vmatpush1.bf16.msra.mxu0 %v514_v62  ;;  %1011 = vmatprep.mubr.bf16.mxu0 %v3742_v3 }
  0x40   : > { %3497 = vmatmul.mubr.msk.bf16.vlgmr.msra.gmra.mrb[16].mxu1 %vm448_vm1, %v3847_v26  ;;  %3502 = vmatprep.subr.msk.bf16.mxu0 %vm452_vm0, %v429_v63 }
  0x41   : > { %1023 = vmatpush1.bf16.msra.mxu1 %v520_v0  ;;  %1054 = vmatprep.mubr.bf16.mxu1 %v3742_v3 }
  0x42   : > { %3504 = vmatprep.subr.msk.bf16.mxu1 %vm452_vm0, %v430_v1 }
  0x46   : > { %3499 = vmatmul.mubr.msk.bf16.vlgmr.msra.gmra.mrb[20].mxu0 %vm448_vm1, %v3847_v26 }
  0x47   : > { %1066 = vmatpush1.bf16.msra.mxu0 %v526_v6  ;;  %1097 = vmatprep.mubr.bf16.mxu0 %v3742_v3 }
  0x48   : > { %3501 = vmatmul.mubr.msk.bf16.vlgmr.msra.gmra.mrb[20].mxu1 %vm448_vm1, %v3847_v26  ;;  %3506 = vmatprep.subr.msk.bf16.mxu0 %vm452_vm0, %v446_v7 }
  0x49   : > { %1109 = vmatpush1.bf16.msra.mxu1 %v532_v9  ;;  %1140 = vmatprep.mubr.bf16.mxu1 %v3742_v3 }
  0x4a   : > { %3508 = vmatprep.subr.msk.bf16.mxu1 %vm452_vm0, %v447_v10 }
  0x4e   : > { %3503 = vmatmul.mubr.msk.bf16.vlgmr.msra.gmra.mrb[24].mxu0 %vm448_vm1, %v3847_v26 }
  0x4f   : > { %1152 = vmatpush1.bf16.msra.mxu0 %v538_v8  ;;  %1183 = vmatprep.mubr.bf16.mxu0 %v3742_v3 }
  0x50   : > { %3505 = vmatmul.mubr.msk.bf16.vlgmr.msra.gmra.mrb[24].mxu1 %vm448_vm1, %v3847_v26 }
  0x51   : > { %1195 = vmatpush1.bf16.msra.mxu1 %v544_v11  ;;  %1226 = vmatprep.mubr.bf16.mxu1 %v3742_v3 }
  0x56   : > { %3507 = vmatmul.mubr.msk.bf16.vlgmr.msra.gmra.mrb[28].mxu0 %vm448_vm1, %v3847_v26 }
  0x57   : > { %1388 = vmatprep.mubr.bf16.mxu0 %v3742_v3 }
  0x58   : > { %3509 = vmatmul.mubr.msk.bf16.vlgmr.msra.gmra.mrb[28].mxu1 %vm448_vm1, %v3847_v26 }
  0x59   : > { %1431 = vmatprep.mubr.bf16.mxu1 %v3742_v3 }
  0x8c   : > { %v3951_v15 = vpop.permute.xlu0 %291 }
  0x90   : > { %v3953_v17 = vpop.permute.xlu0 %296 }
  0xf1   : > { %v583_v16 = vpop.f32.mrb[0].mxu0 }
  0xf2   : > { %v584_v18 = vadd.f32 %v583_v16, %v3951_v15  ;;  %v585_v19 = vpop.f32.mrb[1].mxu0 }
  0xf3   : > { %v586_v20 = vadd.f32 %v585_v19, %v3951_v15  ;;  %v587_v21 = vpop.f32.mrb[2].mxu0  ;;  %v626_v22 = vpop.f32.mrb[0].mxu1 }
  0xf4   : > { %v1237_v23 = vmax.f32 %v584_v18, 0.0  ;;  %v588_v24 = vadd.f32 %v587_v21, %v3953_v17  ;;  %v627_v25 = vadd.f32 %v626_v22, %v3951_v15  ;;  %v589_v26 = vpop.f32.mrb[3].mxu0  ;;  %v628_v27 = vpop.f32.mrb[1].mxu1 }
  0xf5   : > { %v590_v28 = vadd.f32 %v589_v26, %v3953_v17  ;;  %v629_v29 = vadd.f32 %v628_v27, %v3951_v15  ;;  %v630_v30 = vpop.f32.mrb[2].mxu1  ;;  %v1238_v34 = vmax.f32 %v586_v20, 0.0 }
  0xf6   : > { %v1269_v31 = vmax.f32 %v588_v24, 0.0  ;;  %v631_v32 = vadd.f32 %v630_v30, %v3953_v17  ;;  %v632_v33 = vpop.f32.mrb[3].mxu1  ;;  %v1239_v38 = vmax.f32 %v627_v25, 0.0 }
  0xf7   : > { %v1270_v35 = vmax.f32 %v590_v28, 0.0  ;;  %v633_v36 = vadd.f32 %v632_v33, %v3953_v17  ;;  %v1240_v41 = vmax.f32 %v629_v29, 0.0 }
  0xf8   : > { %v1303_v37 = vpack.c.bf16 %v1269_v31, %v1237_v23  ;;  %v1271_v39 = vmax.f32 %v631_v32, 0.0 }
  0xf9   : > { %v1304_v40 = vpack.c.bf16 %v1270_v35, %v1238_v34  ;;  %v1272_v42 = vmax.f32 %v633_v36, 0.0  ;;  %v669_v43 = vpop.f32.mrb[4].mxu0 }
  0xfa   : > { %v1305_v44 = vpack.c.bf16 %v1271_v39, %v1239_v38  ;;  %v670_v45 = vadd.f32 %v669_v43, %v3951_v15  ;;  %v671_v46 = vpop.f32.mrb[5].mxu0 }
  0xfb   : > { %v1306_v47 = vpack.c.bf16 %v1272_v42, %v1240_v41  ;;  %v672_v48 = vadd.f32 %v671_v46, %v3951_v15  ;;  %v673_v49 = vpop.f32.mrb[6].mxu0  ;;  %v712_v50 = vpop.f32.mrb[4].mxu1  ;;  %1356 = vmatprep.subr.bf16.mxu0 %v1304_v40 }
  0xfc   : > { %v674_v52 = vadd.f32 %v673_v49, %v3953_v17  ;;  %v713_v53 = vadd.f32 %v712_v50, %v3951_v15  ;;  %v675_v54 = vpop.f32.mrb[7].mxu0  ;;  %v714_v55 = vpop.f32.mrb[5].mxu1  ;;  %1357 = vmatpush1.bf16.msra.mxu0 %v1303_v37  ;;  %v1241_v59 = vmax.f32 %v670_v45, 0.0 }
  0xfd   : > { %v676_v56 = vadd.f32 %v675_v54, %v3953_v17  ;;  %v715_v57 = vadd.f32 %v714_v55, %v3951_v15  ;;  %v716_v58 = vpop.f32.mrb[6].mxu1  ;;  %1399 = vmatprep.subr.bf16.mxu1 %v1306_v47  ;;  %v1242_v63 = vmax.f32 %v672_v48, 0.0 }
  0xfe   : > { %v1273_v60 = vmax.f32 %v674_v52, 0.0  ;;  %v717_v61 = vadd.f32 %v716_v58, %v3953_v17  ;;  %v718_v62 = vpop.f32.mrb[7].mxu1  ;;  %1400 = vmatpush1.bf16.msra.mxu1 %v1305_v44  ;;  %v1243_v4 = vmax.f32 %v713_v53, 0.0 }
  0xff   : > { %v1274_v0 = vmax.f32 %v676_v56, 0.0  ;;  %v719_v1 = vadd.f32 %v718_v62, %v3953_v17  ;;  %3511 = vmatmul.mubr.msk.bf16.vlgmr.msra.gmra.mrb[32].mxu0 %vm1352_vm2, %v3968_v51  ;;  %v1244_v7 = vmax.f32 %v715_v57, 0.0 }
 0x100   : > { %v1307_v2 = vpack.c.bf16 %v1273_v60, %v1241_v59  ;;  %v1275_v5 = vmax.f32 %v717_v61, 0.0  ;;  %1474 = vmatprep.mubr.bf16.mxu0 %v3742_v3 }
 0x101   : > { %v1308_v6 = vpack.c.bf16 %v1274_v0, %v1242_v63  ;;  %v1276_v9 = vmax.f32 %v719_v1, 0.0  ;;  %v755_v10 = vpop.f32.mrb[8].mxu0  ;;  %3512 = vmatmul.mubr.msk.bf16.vlgmr.msra.gmra.mrb[32].mxu1 %vm1352_vm2, %v3968_v51 }
 0x102   : > { %v1309_v8 = vpack.c.bf16 %v1275_v5, %v1243_v4  ;;  %v756_v11 = vadd.f32 %v755_v10, %v3951_v15  ;;  %v757_v12 = vpop.f32.mrb[9].mxu0  ;;  %1517 = vmatprep.mubr.bf16.mxu1 %v3742_v3 }
 0x103   : > { %v1310_v13 = vpack.c.bf16 %v1276_v9, %v1244_v7  ;;  %v758_v14 = vadd.f32 %v757_v12, %v3951_v15  ;;  %v759_v16 = vpop.f32.mrb[10].mxu0  ;;  %v798_v18 = vpop.f32.mrb[8].mxu1  ;;  %1442 = vmatprep.subr.bf16.mxu0 %v1308_v6 }
 0x104   : > { %v760_v19 = vadd.f32 %v759_v16, %v3953_v17  ;;  %v799_v20 = vadd.f32 %v798_v18, %v3951_v15  ;;  %v761_v21 = vpop.f32.mrb[11].mxu0  ;;  %v800_v22 = vpop.f32.mrb[9].mxu1  ;;  %1443 = vmatpush1.bf16.msra.mxu0 %v1307_v2  ;;  %v1245_v26 = vmax.f32 %v756_v11, 0.0 }
 0x105   : > { %v762_v23 = vadd.f32 %v761_v21, %v3953_v17  ;;  %v801_v24 = vadd.f32 %v800_v22, %v3951_v15  ;;  %v802_v25 = vpop.f32.mrb[10].mxu1  ;;  %1485 = vmatprep.subr.bf16.mxu1 %v1310_v13  ;;  %v1246_v30 = vmax.f32 %v758_v14, 0.0 }
 0x106   : > { %v1277_v27 = vmax.f32 %v760_v19, 0.0  ;;  %v803_v28 = vadd.f32 %v802_v25, %v3953_v17  ;;  %v804_v29 = vpop.f32.mrb[11].mxu1  ;;  %1486 = vmatpush1.bf16.msra.mxu1 %v1309_v8  ;;  %v1247_v34 = vmax.f32 %v799_v20, 0.0 }
 0x107   : > { %v1278_v31 = vmax.f32 %v762_v23, 0.0  ;;  %v805_v32 = vadd.f32 %v804_v29, %v3953_v17  ;;  %3513 = vmatmul.mubr.msk.bf16.vlgmr.msra.gmra.mrb[36].mxu0 %vm1352_vm2, %v3968_v51  ;;  %v1248_v37 = vmax.f32 %v801_v24, 0.0 }
 0x108   : > { %v1311_v33 = vpack.c.bf16 %v1277_v27, %v1245_v26  ;;  %v1279_v35 = vmax.f32 %v803_v28, 0.0  ;;  %1560 = vmatprep.mubr.bf16.mxu0 %v3742_v3 }
 0x109   : > { %v1312_v36 = vpack.c.bf16 %v1278_v31, %v1246_v30  ;;  %v1280_v38 = vmax.f32 %v805_v32, 0.0  ;;  %v841_v39 = vpop.f32.mrb[12].mxu0  ;;  %3514 = vmatmul.mubr.msk.bf16.vlgmr.msra.gmra.mrb[36].mxu1 %vm1352_vm2, %v3968_v51 }
 0x10a   : > { %v1313_v40 = vpack.c.bf16 %v1279_v35, %v1247_v34  ;;  %v842_v41 = vadd.f32 %v841_v39, %v3951_v15  ;;  %v843_v42 = vpop.f32.mrb[13].mxu0  ;;  %1603 = vmatprep.mubr.bf16.mxu1 %v3742_v3 }
 0x10b   : > { %v1314_v43 = vpack.c.bf16 %v1280_v38, %v1248_v37  ;;  %v844_v44 = vadd.f32 %v843_v42, %v3951_v15  ;;  %v845_v45 = vpop.f32.mrb[14].mxu0  ;;  %v884_v46 = vpop.f32.mrb[12].mxu1  ;;  %1528 = vmatprep.subr.bf16.mxu0 %v1312_v36 }
 0x10c   : > { %v846_v47 = vadd.f32 %v845_v45, %v3953_v17  ;;  %v885_v48 = vadd.f32 %v884_v46, %v3951_v15  ;;  %v847_v49 = vpop.f32.mrb[15].mxu0  ;;  %v886_v50 = vpop.f32.mrb[13].mxu1  ;;  %1529 = vmatpush1.bf16.msra.mxu0 %v1311_v33  ;;  %v1249_v55 = vmax.f32 %v842_v41, 0.0 }
 0x10d   : > { %v848_v52 = vadd.f32 %v847_v49, %v3953_v17  ;;  %v887_v53 = vadd.f32 %v886_v50, %v3951_v15  ;;  %v888_v54 = vpop.f32.mrb[14].mxu1  ;;  %1571 = vmatprep.subr.bf16.mxu1 %v1314_v43  ;;  %v1250_v59 = vmax.f32 %v844_v44, 0.0 }
 0x10e   : > { %v1281_v56 = vmax.f32 %v846_v47, 0.0  ;;  %v889_v57 = vadd.f32 %v888_v54, %v3953_v17  ;;  %v890_v58 = vpop.f32.mrb[15].mxu1  ;;  %1572 = vmatpush1.bf16.msra.mxu1 %v1313_v40  ;;  %v1251_v63 = vmax.f32 %v885_v48, 0.0 }
 0x10f   : > { %v1282_v60 = vmax.f32 %v848_v52, 0.0  ;;  %v891_v61 = vadd.f32 %v890_v58, %v3953_v17  ;;  %3515 = vmatmul.mubr.msk.bf16.vlgmr.msra.gmra.mrb[40].mxu0 %vm1352_vm2, %v3968_v51  ;;  %v1252_v2 = vmax.f32 %v887_v53, 0.0 }
 0x110   : > { %v1315_v62 = vpack.c.bf16 %v1281_v56, %v1249_v55  ;;  %v1283_v0 = vmax.f32 %v889_v57, 0.0  ;;  %1646 = vmatprep.mubr.bf16.mxu0 %v3742_v3 }
 0x111   : > { %v1316_v1 = vpack.c.bf16 %v1282_v60, %v1250_v59  ;;  %v1284_v4 = vmax.f32 %v891_v61, 0.0  ;;  %v927_v5 = vpop.f32.mrb[16].mxu0  ;;  %3516 = vmatmul.mubr.msk.bf16.vlgmr.msra.gmra.mrb[40].mxu1 %vm1352_vm2, %v3968_v51 }
 0x112   : > { %v1317_v6 = vpack.c.bf16 %v1283_v0, %v1251_v63  ;;  %v928_v7 = vadd.f32 %v927_v5, %v3951_v15  ;;  %v929_v9 = vpop.f32.mrb[17].mxu0  ;;  %1689 = vmatprep.mubr.bf16.mxu1 %v3742_v3 }
 0x113   : > { %v1318_v10 = vpack.c.bf16 %v1284_v4, %v1252_v2  ;;  %v930_v8 = vadd.f32 %v929_v9, %v3951_v15  ;;  %v931_v11 = vpop.f32.mrb[18].mxu0  ;;  %v970_v12 = vpop.f32.mrb[16].mxu1  ;;  %1614 = vmatprep.subr.bf16.mxu0 %v1316_v1 }
 0x114   : > { %v932_v13 = vadd.f32 %v931_v11, %v3953_v17  ;;  %v971_v14 = vadd.f32 %v970_v12, %v3951_v15  ;;  %v933_v16 = vpop.f32.mrb[19].mxu0  ;;  %v972_v18 = vpop.f32.mrb[17].mxu1  ;;  %1615 = vmatpush1.bf16.msra.mxu0 %v1315_v62  ;;  %v1253_v22 = vmax.f32 %v928_v7, 0.0 }
 0x115   : > { %v934_v19 = vadd.f32 %v933_v16, %v3953_v17  ;;  %v973_v20 = vadd.f32 %v972_v18, %v3951_v15  ;;  %v974_v21 = vpop.f32.mrb[18].mxu1  ;;  %1657 = vmatprep.subr.bf16.mxu1 %v1318_v10  ;;  %v1254_v26 = vmax.f32 %v930_v8, 0.0 }
 0x116   : > { %v1285_v23 = vmax.f32 %v932_v13, 0.0  ;;  %v975_v24 = vadd.f32 %v974_v21, %v3953_v17  ;;  %v976_v25 = vpop.f32.mrb[19].mxu1  ;;  %1658 = vmatpush1.bf16.msra.mxu1 %v1317_v6  ;;  %v1255_v30 = vmax.f32 %v971_v14, 0.0 }
 0x117   : > { %v1286_v27 = vmax.f32 %v934_v19, 0.0  ;;  %v977_v28 = vadd.f32 %v976_v25, %v3953_v17  ;;  %3517 = vmatmul.mubr.msk.bf16.vlgmr.msra.gmra.mrb[44].mxu0 %vm1352_vm2, %v3968_v51  ;;  %v1256_v33 = vmax.f32 %v973_v20, 0.0 }
 0x118   : > { %v1319_v29 = vpack.c.bf16 %v1285_v23, %v1253_v22  ;;  %v1287_v31 = vmax.f32 %v975_v24, 0.0  ;;  %1732 = vmatprep.mubr.bf16.mxu0 %v3742_v3 }
 0x119   : > { %v1320_v32 = vpack.c.bf16 %v1286_v27, %v1254_v26  ;;  %v1288_v34 = vmax.f32 %v977_v28, 0.0  ;;  %v1013_v35 = vpop.f32.mrb[20].mxu0  ;;  %3518 = vmatmul.mubr.msk.bf16.vlgmr.msra.gmra.mrb[44].mxu1 %vm1352_vm2, %v3968_v51 }
 0x11a   : > { %v1321_v36 = vpack.c.bf16 %v1287_v31, %v1255_v30  ;;  %v1014_v37 = vadd.f32 %v1013_v35, %v3951_v15  ;;  %v1015_v38 = vpop.f32.mrb[21].mxu0  ;;  %1775 = vmatprep.mubr.bf16.mxu1 %v3742_v3 }
 0x11b   : > { %v1322_v39 = vpack.c.bf16 %v1288_v34, %v1256_v33  ;;  %v1016_v40 = vadd.f32 %v1015_v38, %v3951_v15  ;;  %v1017_v41 = vpop.f32.mrb[22].mxu0  ;;  %v1056_v42 = vpop.f32.mrb[20].mxu1  ;;  %1700 = vmatprep.subr.bf16.mxu0 %v1320_v32 }
 0x11c   : > { %v1018_v43 = vadd.f32 %v1017_v41, %v3953_v17  ;;  %v1057_v44 = vadd.f32 %v1056_v42, %v3951_v15  ;;  %v1019_v45 = vpop.f32.mrb[23].mxu0  ;;  %v1058_v46 = vpop.f32.mrb[21].mxu1  ;;  %1701 = vmatpush1.bf16.msra.mxu0 %v1319_v29  ;;  %v1257_v50 = vmax.f32 %v1014_v37, 0.0 }
 0x11d   : > { %v1020_v47 = vadd.f32 %v1019_v45, %v3953_v17  ;;  %v1059_v48 = vadd.f32 %v1058_v46, %v3951_v15  ;;  %v1060_v49 = vpop.f32.mrb[22].mxu1  ;;  %1743 = vmatprep.subr.bf16.mxu1 %v1322_v39  ;;  %v1258_v55 = vmax.f32 %v1016_v40, 0.0 }
 0x11e   : > { %v1289_v52 = vmax.f32 %v1018_v43, 0.0  ;;  %v1061_v53 = vadd.f32 %v1060_v49, %v3953_v17  ;;  %v1062_v54 = vpop.f32.mrb[23].mxu1  ;;  %1744 = vmatpush1.bf16.msra.mxu1 %v1321_v36  ;;  %v1259_v59 = vmax.f32 %v1057_v44, 0.0 }
 0x11f   : > { %v1290_v56 = vmax.f32 %v1020_v47, 0.0  ;;  %v1063_v57 = vadd.f32 %v1062_v54, %v3953_v17  ;;  %3519 = vmatmul.mubr.msk.bf16.vlgmr.msra.gmra.mrb[48].mxu0 %vm1352_vm2, %v3968_v51  ;;  %v1260_v62 = vmax.f32 %v1059_v48, 0.0 }
 0x120   : > { %v1323_v58 = vpack.c.bf16 %v1289_v52, %v1257_v50  ;;  %v1291_v60 = vmax.f32 %v1061_v53, 0.0  ;;  %1818 = vmatprep.mubr.bf16.mxu0 %v3742_v3 }
 0x121   : > { %v1324_v61 = vpack.c.bf16 %v1290_v56, %v1258_v55  ;;  %v1292_v63 = vmax.f32 %v1063_v57, 0.0  ;;  %v1099_v0 = vpop.f32.mrb[24].mxu0  ;;  %3520 = vmatmul.mubr.msk.bf16.vlgmr.msra.gmra.mrb[48].mxu1 %vm1352_vm2, %v3968_v51 }
 0x122   : > { %v1325_v1 = vpack.c.bf16 %v1291_v60, %v1259_v59  ;;  %v1100_v2 = vadd.f32 %v1099_v0, %v3951_v15  ;;  %v1101_v4 = vpop.f32.mrb[25].mxu0  ;;  %1861 = vmatprep.mubr.bf16.mxu1 %v3742_v3 }
 0x123   : > { %v1326_v5 = vpack.c.bf16 %v1292_v63, %v1260_v62  ;;  %v1102_v6 = vadd.f32 %v1101_v4, %v3951_v15  ;;  %v1103_v7 = vpop.f32.mrb[26].mxu0  ;;  %v1142_v9 = vpop.f32.mrb[24].mxu1  ;;  %1786 = vmatprep.subr.bf16.mxu0 %v1324_v61 }
 0x124   : > { %v1104_v10 = vadd.f32 %v1103_v7, %v3953_v17  ;;  %v1143_v8 = vadd.f32 %v1142_v9, %v3951_v15  ;;  %v1105_v11 = vpop.f32.mrb[27].mxu0  ;;  %v1144_v12 = vpop.f32.mrb[25].mxu1  ;;  %1787 = vmatpush1.bf16.msra.mxu0 %v1323_v58  ;;  %v1261_v18 = vmax.f32 %v1100_v2, 0.0 }
 0x125   : > { %v1106_v13 = vadd.f32 %v1105_v11, %v3953_v17  ;;  %v1145_v14 = vadd.f32 %v1144_v12, %v3951_v15  ;;  %v1146_v16 = vpop.f32.mrb[26].mxu1  ;;  %1829 = vmatprep.subr.bf16.mxu1 %v1326_v5  ;;  %v1262_v22 = vmax.f32 %v1102_v6, 0.0 }
 0x126   : > { %v1293_v19 = vmax.f32 %v1104_v10, 0.0  ;;  %v1147_v20 = vadd.f32 %v1146_v16, %v3953_v17  ;;  %v1148_v21 = vpop.f32.mrb[27].mxu1  ;;  %1830 = vmatpush1.bf16.msra.mxu1 %v1325_v1  ;;  %v1263_v26 = vmax.f32 %v1143_v8, 0.0 }
 0x127   : > { %v1294_v23 = vmax.f32 %v1106_v13, 0.0  ;;  %v1149_v24 = vadd.f32 %v1148_v21, %v3953_v17  ;;  %3521 = vmatmul.mubr.msk.bf16.vlgmr.msra.gmra.mrb[52].mxu0 %vm1352_vm2, %v3968_v51  ;;  %v1264_v29 = vmax.f32 %v1145_v14, 0.0 }
 0x128   : > { %v1327_v25 = vpack.c.bf16 %v1293_v19, %v1261_v18  ;;  %v1295_v27 = vmax.f32 %v1147_v20, 0.0  ;;  %1904 = vmatprep.mubr.bf16.mxu0 %v3742_v3 }
 0x129   : > { %v1328_v28 = vpack.c.bf16 %v1294_v23, %v1262_v22  ;;  %v1296_v30 = vmax.f32 %v1149_v24, 0.0  ;;  %v1185_v31 = vpop.f32.mrb[28].mxu0  ;;  %3522 = vmatmul.mubr.msk.bf16.vlgmr.msra.gmra.mrb[52].mxu1 %vm1352_vm2, %v3968_v51 }
 0x12a   : > { %v1329_v32 = vpack.c.bf16 %v1295_v27, %v1263_v26  ;;  %v1186_v33 = vadd.f32 %v1185_v31, %v3951_v15  ;;  %v1187_v34 = vpop.f32.mrb[29].mxu0  ;;  %1947 = vmatprep.mubr.bf16.mxu1 %v3742_v3 }
 0x12b   : > { %v1330_v35 = vpack.c.bf16 %v1296_v30, %v1264_v29  ;;  %v1188_v36 = vadd.f32 %v1187_v34, %v3951_v15  ;;  %v1189_v37 = vpop.f32.mrb[30].mxu0  ;;  %v1228_v38 = vpop.f32.mrb[28].mxu1  ;;  %1872 = vmatprep.subr.bf16.mxu0 %v1328_v28 }
 0x12c   : > { %v1190_v39 = vadd.f32 %v1189_v37, %v3953_v17  ;;  %v1229_v40 = vadd.f32 %v1228_v38, %v3951_v15  ;;  %v1191_v41 = vpop.f32.mrb[31].mxu0  ;;  %v1230_v42 = vpop.f32.mrb[29].mxu1  ;;  %1873 = vmatpush1.bf16.msra.mxu0 %v1327_v25  ;;  %v1265_v46 = vmax.f32 %v1186_v33, 0.0  ;;  %v4095_v38 = vld [vmem:[%s4477_s5] sm:$0xff]  }
 0x12d   : > { %v1192_v43 = vadd.f32 %v1191_v41, %v3953_v17  ;;  %v1231_v44 = vadd.f32 %v1230_v42, %v3951_v15  ;;  %v1232_v45 = vpop.f32.mrb[30].mxu1  ;;  %1915 = vmatprep.subr.bf16.mxu1 %v1330_v35  ;;  %v1266_v50 = vmax.f32 %v1188_v36, 0.0 }
 0x12e   : > { %v1297_v47 = vmax.f32 %v1190_v39, 0.0  ;;  %v1233_v48 = vadd.f32 %v1232_v45, %v3953_v17  ;;  %v1234_v49 = vpop.f32.mrb[31].mxu1  ;;  %1916 = vmatpush1.bf16.msra.mxu1 %v1329_v32  ;;  %v1267_v55 = vmax.f32 %v1229_v40, 0.0 }
 0x12f   : > { %v1298_v52 = vmax.f32 %v1192_v43, 0.0  ;;  %v1235_v53 = vadd.f32 %v1234_v49, %v3953_v17  ;;  %3523 = vmatmul.mubr.msk.bf16.vlgmr.msra.gmra.mrb[56].mxu0 %vm1352_vm2, %v3968_v51  ;;  %v1268_v57 = vmax.f32 %v1231_v44, 0.0  ;;  %v4072_v17 = vpop.permute.xlu1 %1339 }
 0x130   : > { %v1331_v54 = vpack.c.bf16 %v1297_v47, %v1265_v46  ;;  %v1299_v56 = vmax.f32 %v1233_v48, 0.0  ;;  %1990 = vmatprep.mubr.bf16.mxu0 %v3742_v3 }
 0x131   : > { %v1332_v15 = vpack.c.bf16 %v1298_v52, %v1266_v50  ;;  %v1300_v58 = vmax.f32 %v1235_v53, 0.0  ;;  %3524 = vmatmul.mubr.msk.bf16.vlgmr.msra.gmra.mrb[56].mxu1 %vm1352_vm2, %v3968_v51 }
 0x132   : > { %v1333_v59 = vpack.c.bf16 %v1299_v56, %v1267_v55  ;;  %2033 = vmatprep.mubr.bf16.mxu1 %v3742_v3 }
 0x133   : > { %v1334_v60 = vpack.c.bf16 %v1300_v58, %v1268_v57  ;;  %1958 = vmatprep.subr.bf16.mxu0 %v1332_v15  ;;  %v4075_v62 = vpop.permute.xlu1 %1344 }
 0x134   : > { %1959 = vmatpush1.bf16.msra.mxu0 %v1331_v54 }
 0x135   : > { %2001 = vmatprep.subr.bf16.mxu1 %v1334_v60 }
 0x136   : > { %2002 = vmatpush1.bf16.msra.mxu1 %v1333_v59 }
 0x137   : > { %3525 = vmatmul.mubr.msk.bf16.vlgmr.msra.gmra.mrb[60].mxu0 %vm1352_vm2, %v3968_v51 }
 0x138   : > { %2194 = vmatprep.mubr.bf16.mxu0 %v3742_v3 }
 0x139   : > { %3526 = vmatmul.mubr.msk.bf16.vlgmr.msra.gmra.mrb[60].mxu1 %vm1352_vm2, %v3968_v51 }
 0x13a   : > { %2237 = vmatprep.mubr.bf16.mxu1 %v3742_v3 }
 0x1d2   : > { %v1390_v61 = vpop.f32.mrb[32].mxu0 }
 0x1d3   : > { %v1391_v63 = vadd.f32 %v1390_v61, %v4072_v17  ;;  %v1392_v0 = vpop.f32.mrb[33].mxu0 }
 0x1d4   : > { %v1393_v1 = vadd.f32 %v1392_v0, %v4072_v17  ;;  %v1394_v2 = vpop.f32.mrb[34].mxu0  ;;  %v1433_v4 = vpop.f32.mrb[32].mxu1 }
 0x1d5   : > { %v2044_v5 = vmax.f32 %v1391_v63, 0.0  ;;  %v1395_v6 = vadd.f32 %v1394_v2, %v4075_v62  ;;  %v1434_v51 = vadd.f32 %v1433_v4, %v4072_v17  ;;  %v1396_v7 = vpop.f32.mrb[35].mxu0  ;;  %v1435_v9 = vpop.f32.mrb[33].mxu1 }
 0x1d6   : > { %v2045_v10 = vmax.f32 %v1393_v1, 0.0  ;;  %v1397_v8 = vadd.f32 %v1396_v7, %v4075_v62  ;;  %v1436_v11 = vadd.f32 %v1435_v9, %v4072_v17  ;;  %v1437_v12 = vpop.f32.mrb[34].mxu1 }
 0x1d7   : > { %v2076_v13 = vmax.f32 %v1395_v6, 0.0  ;;  %v2046_v14 = vmax.f32 %v1434_v51, 0.0  ;;  %v1438_v16 = vadd.f32 %v1437_v12, %v4075_v62  ;;  %v1439_v18 = vpop.f32.mrb[35].mxu1 }
 0x1d8   : > { %v3613_v19 = vpack.c.bf16 %v2045_v10, %v2044_v5  ;;  %v2077_v20 = vmax.f32 %v1397_v8, 0.0  ;;  %v2047_v21 = vmax.f32 %v1436_v11, 0.0  ;;  %v1440_v22 = vadd.f32 %v1439_v18, %v4075_v62 }
 0x1d9   : > { %v2110_v23 = vpack.c.bf16 %v2076_v13, %v2044_v5  ;;  %v2078_v24 = vmax.f32 %v1438_v16, 0.0 }
 0x1da   : > { %3010 = vst [vmem:[%s4085_s24] sm:$0xff] %v3613_v19  ;;  %v2111_v25 = vpack.c.bf16 %v2077_v20, %v2045_v10  ;;  %v3629_v26 = vpack.c.bf16 %v2077_v20, %v2076_v13  ;;  %v3614_v27 = vpack.c.bf16 %v2047_v21, %v2046_v14  ;;  %v2079_v28 = vmax.f32 %v1440_v22, 0.0  ;;  %v1476_v29 = vpop.f32.mrb[36].mxu0 }
 0x1db   : > { %v2112_v30 = vpack.c.bf16 %v2078_v24, %v2046_v14  ;;  %v1477_v31 = vadd.f32 %v1476_v29, %v4072_v17  ;;  %v1478_v32 = vpop.f32.mrb[37].mxu0 }
 0x1dc   : > { %3026 = vst [vmem:[%s4085_s24 + $0x80] sm:$0xff] %v3629_v26  ;;  %3011 = vst [vmem:[%s4085_s24 + $0x8] sm:$0xff] %v3614_v27  ;;  %v2113_v33 = vpack.c.bf16 %v2079_v28, %v2047_v21  ;;  %v3630_v34 = vpack.c.bf16 %v2079_v28, %v2078_v24  ;;  %v1479_v35 = vadd.f32 %v1478_v32, %v4072_v17  ;;  %v1480_v36 = vpop.f32.mrb[38].mxu0  ;;  %v1519_v37 = vpop.f32.mrb[36].mxu1  ;;  %2162 = vmatprep.subr.bf16.mxu0 %v2111_v25 }
 0x1dd   : > { %v2048_v39 = vmax.f32 %v1477_v31, 0.0  ;;  %v1481_v40 = vadd.f32 %v1480_v36, %v4075_v62  ;;  %v1520_v41 = vadd.f32 %v1519_v37, %v4072_v17  ;;  %v1482_v42 = vpop.f32.mrb[39].mxu0  ;;  %v1521_v43 = vpop.f32.mrb[37].mxu1  ;;  %2163 = vmatpush1.bf16.msra.mxu0 %v2110_v23 }
 0x1de   : > { %3027 = vst [vmem:[%s4085_s24 + $0x88] sm:$0xff] %v3630_v34  ;;  %v2049_v44 = vmax.f32 %v1479_v35, 0.0  ;;  %v1483_v45 = vadd.f32 %v1482_v42, %v4075_v62  ;;  %v1522_v46 = vadd.f32 %v1521_v43, %v4072_v17  ;;  %v1523_v47 = vpop.f32.mrb[38].mxu1  ;;  %2205 = vmatprep.subr.bf16.mxu1 %v2113_v33 }
 0x1df   : > { %v2080_v48 = vmax.f32 %v1481_v40, 0.0  ;;  %v2050_v49 = vmax.f32 %v1520_v41, 0.0  ;;  %v1524_v50 = vadd.f32 %v1523_v47, %v4075_v62  ;;  %v1525_v52 = vpop.f32.mrb[39].mxu1  ;;  %2206 = vmatpush1.bf16.msra.mxu1 %v2112_v30 }
 0x1e0   : > { %v3615_v53 = vpack.c.bf16 %v2049_v44, %v2048_v39  ;;  %v2081_v54 = vmax.f32 %v1483_v45, 0.0  ;;  %v2051_v55 = vmax.f32 %v1522_v46, 0.0  ;;  %v1526_v56 = vadd.f32 %v1525_v52, %v4075_v62  ;;  %3528 = vmatmul.mubr.msk.bf16.vlgmr.msra.gmra.mrb[64].mxu0 %vm1352_vm2, %v4095_v38 }
 0x1e1   : > { %v2114_v15 = vpack.c.bf16 %v2080_v48, %v2048_v39  ;;  %v2082_v57 = vmax.f32 %v1524_v50, 0.0  ;;  %2280 = vmatprep.mubr.bf16.mxu0 %v3742_v3 }
 0x1e2   : > { %3012 = vst [vmem:[%s4085_s24 + $0x10] sm:$0xff] %v3615_v53  ;;  %v2115_v58 = vpack.c.bf16 %v2081_v54, %v2049_v44  ;;  %v3631_v59 = vpack.c.bf16 %v2081_v54, %v2080_v48  ;;  %v3616_v60 = vpack.c.bf16 %v2051_v55, %v2050_v49  ;;  %v2083_v61 = vmax.f32 %v1526_v56, 0.0  ;;  %v1562_v63 = vpop.f32.mrb[40].mxu0  ;;  %3529 = vmatmul.mubr.msk.bf16.vlgmr.msra.gmra.mrb[64].mxu1 %vm1352_vm2, %v4095_v38 }
 0x1e3   : > { %v2116_v0 = vpack.c.bf16 %v2082_v57, %v2050_v49  ;;  %v1563_v1 = vadd.f32 %v1562_v63, %v4072_v17  ;;  %v1564_v2 = vpop.f32.mrb[41].mxu0  ;;  %2323 = vmatprep.mubr.bf16.mxu1 %v3742_v3 }
 0x1e4   : > { %3028 = vst [vmem:[%s4085_s24 + $0x90] sm:$0xff] %v3631_v59  ;;  %3013 = vst [vmem:[%s4085_s24 + $0x18] sm:$0xff] %v3616_v60  ;;  %v2117_v4 = vpack.c.bf16 %v2083_v61, %v2051_v55  ;;  %v3632_v5 = vpack.c.bf16 %v2083_v61, %v2082_v57  ;;  %v1565_v6 = vadd.f32 %v1564_v2, %v4072_v17  ;;  %v1566_v51 = vpop.f32.mrb[42].mxu0  ;;  %v1605_v7 = vpop.f32.mrb[40].mxu1  ;;  %2248 = vmatprep.subr.bf16.mxu0 %v2115_v58 }
 0x1e5   : > { %v2052_v9 = vmax.f32 %v1563_v1, 0.0  ;;  %v1567_v10 = vadd.f32 %v1566_v51, %v4075_v62  ;;  %v1606_v8 = vadd.f32 %v1605_v7, %v4072_v17  ;;  %v1568_v11 = vpop.f32.mrb[43].mxu0  ;;  %v1607_v12 = vpop.f32.mrb[41].mxu1  ;;  %2249 = vmatpush1.bf16.msra.mxu0 %v2114_v15 }
 0x1e6   : > { %3029 = vst [vmem:[%s4085_s24 + $0x98] sm:$0xff] %v3632_v5  ;;  %v2053_v13 = vmax.f32 %v1565_v6, 0.0  ;;  %v1569_v14 = vadd.f32 %v1568_v11, %v4075_v62  ;;  %v1608_v16 = vadd.f32 %v1607_v12, %v4072_v17  ;;  %v1609_v18 = vpop.f32.mrb[42].mxu1  ;;  %2291 = vmatprep.subr.bf16.mxu1 %v2117_v4 }
 0x1e7   : > { %v2084_v19 = vmax.f32 %v1567_v10, 0.0  ;;  %v2054_v20 = vmax.f32 %v1606_v8, 0.0  ;;  %v1610_v21 = vadd.f32 %v1609_v18, %v4075_v62  ;;  %v1611_v22 = vpop.f32.mrb[43].mxu1  ;;  %2292 = vmatpush1.bf16.msra.mxu1 %v2116_v0 }
 0x1e8   : > { %v3617_v23 = vpack.c.bf16 %v2053_v13, %v2052_v9  ;;  %v2085_v24 = vmax.f32 %v1569_v14, 0.0  ;;  %v2055_v25 = vmax.f32 %v1608_v16, 0.0  ;;  %v1612_v26 = vadd.f32 %v1611_v22, %v4075_v62  ;;  %3530 = vmatmul.mubr.msk.bf16.vlgmr.msra.gmra.mrb[68].mxu0 %vm1352_vm2, %v4095_v38 }
 0x1e9   : > { %v2118_v27 = vpack.c.bf16 %v2084_v19, %v2052_v9  ;;  %v2086_v28 = vmax.f32 %v1610_v21, 0.0  ;;  %2366 = vmatprep.mubr.bf16.mxu0 %v3742_v3 }
 0x1ea   : > { %3014 = vst [vmem:[%s4085_s24 + $0x20] sm:$0xff] %v3617_v23  ;;  %v2119_v29 = vpack.c.bf16 %v2085_v24, %v2053_v13  ;;  %v3633_v30 = vpack.c.bf16 %v2085_v24, %v2084_v19  ;;  %v3618_v31 = vpack.c.bf16 %v2055_v25, %v2054_v20  ;;  %v2087_v32 = vmax.f32 %v1612_v26, 0.0  ;;  %v1648_v33 = vpop.f32.mrb[44].mxu0  ;;  %3531 = vmatmul.mubr.msk.bf16.vlgmr.msra.gmra.mrb[68].mxu1 %vm1352_vm2, %v4095_v38 }
 0x1eb   : > { %v2120_v34 = vpack.c.bf16 %v2086_v28, %v2054_v20  ;;  %v1649_v35 = vadd.f32 %v1648_v33, %v4072_v17  ;;  %v1650_v36 = vpop.f32.mrb[45].mxu0  ;;  %2409 = vmatprep.mubr.bf16.mxu1 %v3742_v3 }
 0x1ec   : > { %3030 = vst [vmem:[%s4085_s24 + $0xa0] sm:$0xff] %v3633_v30  ;;  %3015 = vst [vmem:[%s4085_s24 + $0x28] sm:$0xff] %v3618_v31  ;;  %v2121_v37 = vpack.c.bf16 %v2087_v32, %v2055_v25  ;;  %v3634_v39 = vpack.c.bf16 %v2087_v32, %v2086_v28  ;;  %v1651_v40 = vadd.f32 %v1650_v36, %v4072_v17  ;;  %v1652_v41 = vpop.f32.mrb[46].mxu0  ;;  %v1691_v42 = vpop.f32.mrb[44].mxu1  ;;  %2334 = vmatprep.subr.bf16.mxu0 %v2119_v29 }
 0x1ed   : > { %v2056_v43 = vmax.f32 %v1649_v35, 0.0  ;;  %v1653_v44 = vadd.f32 %v1652_v41, %v4075_v62  ;;  %v1692_v45 = vadd.f32 %v1691_v42, %v4072_v17  ;;  %v1654_v46 = vpop.f32.mrb[47].mxu0  ;;  %v1693_v47 = vpop.f32.mrb[45].mxu1  ;;  %2335 = vmatpush1.bf16.msra.mxu0 %v2118_v27 }
 0x1ee   : > { %3031 = vst [vmem:[%s4085_s24 + $0xa8] sm:$0xff] %v3634_v39  ;;  %v2057_v48 = vmax.f32 %v1651_v40, 0.0  ;;  %v1655_v49 = vadd.f32 %v1654_v46, %v4075_v62  ;;  %v1694_v50 = vadd.f32 %v1693_v47, %v4072_v17  ;;  %v1695_v52 = vpop.f32.mrb[46].mxu1  ;;  %2377 = vmatprep.subr.bf16.mxu1 %v2121_v37 }
 0x1ef   : > { %v2088_v53 = vmax.f32 %v1653_v44, 0.0  ;;  %v2058_v54 = vmax.f32 %v1692_v45, 0.0  ;;  %v1696_v55 = vadd.f32 %v1695_v52, %v4075_v62  ;;  %v1697_v56 = vpop.f32.mrb[47].mxu1  ;;  %2378 = vmatpush1.bf16.msra.mxu1 %v2120_v34 }
 0x1f0   : > { %v3619_v15 = vpack.c.bf16 %v2057_v48, %v2056_v43  ;;  %v2089_v57 = vmax.f32 %v1655_v49, 0.0  ;;  %v2059_v58 = vmax.f32 %v1694_v50, 0.0  ;;  %v1698_v59 = vadd.f32 %v1697_v56, %v4075_v62  ;;  %3532 = vmatmul.mubr.msk.bf16.vlgmr.msra.gmra.mrb[72].mxu0 %vm1352_vm2, %v4095_v38 }
 0x1f1   : > { %v2122_v60 = vpack.c.bf16 %v2088_v53, %v2056_v43  ;;  %v2090_v61 = vmax.f32 %v1696_v55, 0.0  ;;  %2452 = vmatprep.mubr.bf16.mxu0 %v3742_v3 }
 0x1f2   : > { %3016 = vst [vmem:[%s4085_s24 + $0x30] sm:$0xff] %v3619_v15  ;;  %v2123_v63 = vpack.c.bf16 %v2089_v57, %v2057_v48  ;;  %v3635_v0 = vpack.c.bf16 %v2089_v57, %v2088_v53  ;;  %v3620_v1 = vpack.c.bf16 %v2059_v58, %v2058_v54  ;;  %v2091_v2 = vmax.f32 %v1698_v59, 0.0  ;;  %v1734_v4 = vpop.f32.mrb[48].mxu0  ;;  %3533 = vmatmul.mubr.msk.bf16.vlgmr.msra.gmra.mrb[72].mxu1 %vm1352_vm2, %v4095_v38 }
 0x1f3   : > { %v2124_v5 = vpack.c.bf16 %v2090_v61, %v2058_v54  ;;  %v1735_v6 = vadd.f32 %v1734_v4, %v4072_v17  ;;  %v1736_v51 = vpop.f32.mrb[49].mxu0  ;;  %2495 = vmatprep.mubr.bf16.mxu1 %v3742_v3 }
 0x1f4   : > { %3032 = vst [vmem:[%s4085_s24 + $0xb0] sm:$0xff] %v3635_v0  ;;  %3017 = vst [vmem:[%s4085_s24 + $0x38] sm:$0xff] %v3620_v1  ;;  %v2125_v7 = vpack.c.bf16 %v2091_v2, %v2059_v58  ;;  %v3636_v9 = vpack.c.bf16 %v2091_v2, %v2090_v61  ;;  %v1737_v10 = vadd.f32 %v1736_v51, %v4072_v17  ;;  %v1738_v8 = vpop.f32.mrb[50].mxu0  ;;  %v1777_v11 = vpop.f32.mrb[48].mxu1  ;;  %2420 = vmatprep.subr.bf16.mxu0 %v2123_v63 }
 0x1f5   : > { %v2060_v12 = vmax.f32 %v1735_v6, 0.0  ;;  %v1739_v13 = vadd.f32 %v1738_v8, %v4075_v62  ;;  %v1778_v14 = vadd.f32 %v1777_v11, %v4072_v17  ;;  %v1740_v16 = vpop.f32.mrb[51].mxu0  ;;  %v1779_v18 = vpop.f32.mrb[49].mxu1  ;;  %2421 = vmatpush1.bf16.msra.mxu0 %v2122_v60 }
 0x1f6   : > { %3033 = vst [vmem:[%s4085_s24 + $0xb8] sm:$0xff] %v3636_v9  ;;  %v2061_v19 = vmax.f32 %v1737_v10, 0.0  ;;  %v1741_v20 = vadd.f32 %v1740_v16, %v4075_v62  ;;  %v1780_v21 = vadd.f32 %v1779_v18, %v4072_v17  ;;  %v1781_v22 = vpop.f32.mrb[50].mxu1  ;;  %2463 = vmatprep.subr.bf16.mxu1 %v2125_v7 }
 0x1f7   : > { %v2092_v23 = vmax.f32 %v1739_v13, 0.0  ;;  %v2062_v24 = vmax.f32 %v1778_v14, 0.0  ;;  %v1782_v25 = vadd.f32 %v1781_v22, %v4075_v62  ;;  %v1783_v26 = vpop.f32.mrb[51].mxu1  ;;  %2464 = vmatpush1.bf16.msra.mxu1 %v2124_v5 }
 0x1f8   : > { %v3621_v27 = vpack.c.bf16 %v2061_v19, %v2060_v12  ;;  %v2093_v28 = vmax.f32 %v1741_v20, 0.0  ;;  %v2063_v29 = vmax.f32 %v1780_v21, 0.0  ;;  %v1784_v30 = vadd.f32 %v1783_v26, %v4075_v62  ;;  %3534 = vmatmul.mubr.msk.bf16.vlgmr.msra.gmra.mrb[76].mxu0 %vm1352_vm2, %v4095_v38 }
 0x1f9   : > { %v2126_v31 = vpack.c.bf16 %v2092_v23, %v2060_v12  ;;  %v2094_v32 = vmax.f32 %v1782_v25, 0.0  ;;  %2538 = vmatprep.mubr.bf16.mxu0 %v3742_v3 }
 0x1fa   : > { %3018 = vst [vmem:[%s4085_s24 + $0x40] sm:$0xff] %v3621_v27  ;;  %v2127_v33 = vpack.c.bf16 %v2093_v28, %v2061_v19  ;;  %v3637_v34 = vpack.c.bf16 %v2093_v28, %v2092_v23  ;;  %v3622_v35 = vpack.c.bf16 %v2063_v29, %v2062_v24  ;;  %v2095_v36 = vmax.f32 %v1784_v30, 0.0  ;;  %v1820_v37 = vpop.f32.mrb[52].mxu0  ;;  %3535 = vmatmul.mubr.msk.bf16.vlgmr.msra.gmra.mrb[76].mxu1 %vm1352_vm2, %v4095_v38 }
 0x1fb   : > { %v2128_v39 = vpack.c.bf16 %v2094_v32, %v2062_v24  ;;  %v1821_v40 = vadd.f32 %v1820_v37, %v4072_v17  ;;  %v1822_v41 = vpop.f32.mrb[53].mxu0  ;;  %2581 = vmatprep.mubr.bf16.mxu1 %v3742_v3 }
 0x1fc   : > { %3034 = vst [vmem:[%s4085_s24 + $0xc0] sm:$0xff] %v3637_v34  ;;  %3019 = vst [vmem:[%s4085_s24 + $0x48] sm:$0xff] %v3622_v35  ;;  %v2129_v42 = vpack.c.bf16 %v2095_v36, %v2063_v29  ;;  %v3638_v43 = vpack.c.bf16 %v2095_v36, %v2094_v32  ;;  %v1823_v44 = vadd.f32 %v1822_v41, %v4072_v17  ;;  %v1824_v45 = vpop.f32.mrb[54].mxu0  ;;  %v1863_v46 = vpop.f32.mrb[52].mxu1  ;;  %2506 = vmatprep.subr.bf16.mxu0 %v2127_v33 }
 0x1fd   : > { %v2064_v47 = vmax.f32 %v1821_v40, 0.0  ;;  %v1825_v48 = vadd.f32 %v1824_v45, %v4075_v62  ;;  %v1864_v49 = vadd.f32 %v1863_v46, %v4072_v17  ;;  %v1826_v50 = vpop.f32.mrb[55].mxu0  ;;  %v1865_v52 = vpop.f32.mrb[53].mxu1  ;;  %2507 = vmatpush1.bf16.msra.mxu0 %v2126_v31 }
 0x1fe   : > { %3035 = vst [vmem:[%s4085_s24 + $0xc8] sm:$0xff] %v3638_v43  ;;  %v2065_v53 = vmax.f32 %v1823_v44, 0.0  ;;  %v1827_v54 = vadd.f32 %v1826_v50, %v4075_v62  ;;  %v1866_v55 = vadd.f32 %v1865_v52, %v4072_v17  ;;  %v1867_v56 = vpop.f32.mrb[54].mxu1  ;;  %2549 = vmatprep.subr.bf16.mxu1 %v2129_v42 }
 0x1ff   : > { %v2096_v15 = vmax.f32 %v1825_v48, 0.0  ;;  %v2066_v57 = vmax.f32 %v1864_v49, 0.0  ;;  %v1868_v58 = vadd.f32 %v1867_v56, %v4075_v62  ;;  %v1869_v59 = vpop.f32.mrb[55].mxu1  ;;  %2550 = vmatpush1.bf16.msra.mxu1 %v2128_v39 }
 0x200   : > { %v3623_v60 = vpack.c.bf16 %v2065_v53, %v2064_v47  ;;  %v2097_v61 = vmax.f32 %v1827_v54, 0.0  ;;  %v2067_v63 = vmax.f32 %v1866_v55, 0.0  ;;  %v1870_v0 = vadd.f32 %v1869_v59, %v4075_v62  ;;  %3536 = vmatmul.mubr.msk.bf16.vlgmr.msra.gmra.mrb[80].mxu0 %vm1352_vm2, %v4095_v38 }
 0x201   : > { %v2130_v1 = vpack.c.bf16 %v2096_v15, %v2064_v47  ;;  %v2098_v2 = vmax.f32 %v1868_v58, 0.0  ;;  %2624 = vmatprep.mubr.bf16.mxu0 %v3742_v3 }
 0x202   : > { %3020 = vst [vmem:[%s4085_s24 + $0x50] sm:$0xff] %v3623_v60  ;;  %v2131_v4 = vpack.c.bf16 %v2097_v61, %v2065_v53  ;;  %v3639_v5 = vpack.c.bf16 %v2097_v61, %v2096_v15  ;;  %v3624_v6 = vpack.c.bf16 %v2067_v63, %v2066_v57  ;;  %v2099_v51 = vmax.f32 %v1870_v0, 0.0  ;;  %v1906_v7 = vpop.f32.mrb[56].mxu0  ;;  %3537 = vmatmul.mubr.msk.bf16.vlgmr.msra.gmra.mrb[80].mxu1 %vm1352_vm2, %v4095_v38 }
 0x203   : > { %v2132_v9 = vpack.c.bf16 %v2098_v2, %v2066_v57  ;;  %v1907_v10 = vadd.f32 %v1906_v7, %v4072_v17  ;;  %v1908_v8 = vpop.f32.mrb[57].mxu0  ;;  %2667 = vmatprep.mubr.bf16.mxu1 %v3742_v3 }
 0x204   : > { %3036 = vst [vmem:[%s4085_s24 + $0xd0] sm:$0xff] %v3639_v5  ;;  %3021 = vst [vmem:[%s4085_s24 + $0x58] sm:$0xff] %v3624_v6  ;;  %v2133_v11 = vpack.c.bf16 %v2099_v51, %v2067_v63  ;;  %v3640_v12 = vpack.c.bf16 %v2099_v51, %v2098_v2  ;;  %v1909_v13 = vadd.f32 %v1908_v8, %v4072_v17  ;;  %v1910_v14 = vpop.f32.mrb[58].mxu0  ;;  %v1949_v16 = vpop.f32.mrb[56].mxu1  ;;  %2592 = vmatprep.subr.bf16.mxu0 %v2131_v4 }
 0x205   : > { %v2068_v18 = vmax.f32 %v1907_v10, 0.0  ;;  %v1911_v19 = vadd.f32 %v1910_v14, %v4075_v62  ;;  %v1950_v20 = vadd.f32 %v1949_v16, %v4072_v17  ;;  %v1912_v21 = vpop.f32.mrb[59].mxu0  ;;  %v1951_v22 = vpop.f32.mrb[57].mxu1  ;;  %2593 = vmatpush1.bf16.msra.mxu0 %v2130_v1 }
 0x206   : > { %3037 = vst [vmem:[%s4085_s24 + $0xd8] sm:$0xff] %v3640_v12  ;;  %v2069_v23 = vmax.f32 %v1909_v13, 0.0  ;;  %v1913_v24 = vadd.f32 %v1912_v21, %v4075_v62  ;;  %v1952_v25 = vadd.f32 %v1951_v22, %v4072_v17  ;;  %v1953_v26 = vpop.f32.mrb[58].mxu1  ;;  %2635 = vmatprep.subr.bf16.mxu1 %v2133_v11  ;;  %v4226_v12 = vpop.permute.xlu0 %2146 }
 0x207   : > { %v2100_v27 = vmax.f32 %v1911_v19, 0.0  ;;  %v2070_v28 = vmax.f32 %v1950_v20, 0.0  ;;  %v1954_v29 = vadd.f32 %v1953_v26, %v4075_v62  ;;  %v1955_v30 = vpop.f32.mrb[59].mxu1  ;;  %2636 = vmatpush1.bf16.msra.mxu1 %v2132_v9  ;;  %v4228_v14 = vpop.permute.xlu1 %2151 }
 0x208   : > { %v3625_v31 = vpack.c.bf16 %v2069_v23, %v2068_v18  ;;  %v2101_v32 = vmax.f32 %v1913_v24, 0.0  ;;  %v2071_v33 = vmax.f32 %v1952_v25, 0.0  ;;  %v1956_v34 = vadd.f32 %v1955_v30, %v4075_v62  ;;  %3538 = vmatmul.mubr.msk.bf16.vlgmr.msra.gmra.mrb[84].mxu0 %vm1352_vm2, %v4095_v38 }
 0x209   : > { %v2134_v35 = vpack.c.bf16 %v2100_v27, %v2068_v18  ;;  %v2102_v36 = vmax.f32 %v1954_v29, 0.0  ;;  %2710 = vmatprep.mubr.bf16.mxu0 %v3742_v3 }
 0x20a   : > { %3022 = vst [vmem:[%s4085_s24 + $0x60] sm:$0xff] %v3625_v31  ;;  %v2135_v37 = vpack.c.bf16 %v2101_v32, %v2069_v23  ;;  %v3641_v39 = vpack.c.bf16 %v2101_v32, %v2100_v27  ;;  %v3626_v40 = vpack.c.bf16 %v2071_v33, %v2070_v28  ;;  %v2103_v41 = vmax.f32 %v1956_v34, 0.0  ;;  %v1992_v42 = vpop.f32.mrb[60].mxu0  ;;  %3539 = vmatmul.mubr.msk.bf16.vlgmr.msra.gmra.mrb[84].mxu1 %vm1352_vm2, %v4095_v38 }
 0x20b   : > { %v2136_v43 = vpack.c.bf16 %v2102_v36, %v2070_v28  ;;  %v1993_v44 = vadd.f32 %v1992_v42, %v4072_v17  ;;  %v1994_v45 = vpop.f32.mrb[61].mxu0  ;;  %2753 = vmatprep.mubr.bf16.mxu1 %v3742_v3 }
 0x20c   : > { %3038 = vst [vmem:[%s4085_s24 + $0xe0] sm:$0xff] %v3641_v39  ;;  %3023 = vst [vmem:[%s4085_s24 + $0x68] sm:$0xff] %v3626_v40  ;;  %v2137_v46 = vpack.c.bf16 %v2103_v41, %v2071_v33  ;;  %v3642_v47 = vpack.c.bf16 %v2103_v41, %v2102_v36  ;;  %v1995_v48 = vadd.f32 %v1994_v45, %v4072_v17  ;;  %v1996_v49 = vpop.f32.mrb[62].mxu0  ;;  %v2035_v50 = vpop.f32.mrb[60].mxu1  ;;  %2678 = vmatprep.subr.bf16.mxu0 %v2135_v37 }
 0x20d   : > { %v2072_v52 = vmax.f32 %v1993_v44, 0.0  ;;  %v1997_v53 = vadd.f32 %v1996_v49, %v4075_v62  ;;  %v2036_v54 = vadd.f32 %v2035_v50, %v4072_v17  ;;  %v1998_v55 = vpop.f32.mrb[63].mxu0  ;;  %v2037_v56 = vpop.f32.mrb[61].mxu1  ;;  %2679 = vmatpush1.bf16.msra.mxu0 %v2134_v35 }
 0x20e   : > { %3039 = vst [vmem:[%s4085_s24 + $0xe8] sm:$0xff] %v3642_v47  ;;  %v2073_v15 = vmax.f32 %v1995_v48, 0.0  ;;  %v1999_v57 = vadd.f32 %v1998_v55, %v4075_v62  ;;  %v2038_v58 = vadd.f32 %v2037_v56, %v4072_v17  ;;  %v2039_v59 = vpop.f32.mrb[62].mxu1  ;;  %2721 = vmatprep.subr.bf16.mxu1 %v2137_v46 }
 0x20f   : > { %v2104_v60 = vmax.f32 %v1997_v53, 0.0  ;;  %v2074_v61 = vmax.f32 %v2036_v54, 0.0  ;;  %v2040_v63 = vadd.f32 %v2039_v59, %v4075_v62  ;;  %v2041_v0 = vpop.f32.mrb[63].mxu1  ;;  %2722 = vmatpush1.bf16.msra.mxu1 %v2136_v43 }
 0x210   : > { %v3627_v1 = vpack.c.bf16 %v2073_v15, %v2072_v52  ;;  %v2105_v2 = vmax.f32 %v1999_v57, 0.0  ;;  %v2075_v4 = vmax.f32 %v2038_v58, 0.0  ;;  %v2042_v5 = vadd.f32 %v2041_v0, %v4075_v62  ;;  %3540 = vmatmul.mubr.msk.bf16.vlgmr.msra.gmra.mrb[88].mxu0 %vm1352_vm2, %v4095_v38 }
 0x211   : > { %v2138_v17 = vpack.c.bf16 %v2104_v60, %v2072_v52  ;;  %v2106_v6 = vmax.f32 %v2040_v63, 0.0  ;;  %2796 = vmatprep.mubr.bf16.mxu0 %v3742_v3 }
 0x212   : > { %3024 = vst [vmem:[%s4085_s24 + $0x70] sm:$0xff] %v3627_v1  ;;  %v2139_v51 = vpack.c.bf16 %v2105_v2, %v2073_v15  ;;  %v3643_v7 = vpack.c.bf16 %v2105_v2, %v2104_v60  ;;  %v3628_v9 = vpack.c.bf16 %v2075_v4, %v2074_v61  ;;  %v2107_v10 = vmax.f32 %v2042_v5, 0.0  ;;  %3541 = vmatmul.mubr.msk.bf16.vlgmr.msra.gmra.mrb[88].mxu1 %vm1352_vm2, %v4095_v38 }
 0x213   : > { %v2140_v8 = vpack.c.bf16 %v2106_v6, %v2074_v61  ;;  %2839 = vmatprep.mubr.bf16.mxu1 %v3742_v3 }
 0x214   : > { %3040 = vst [vmem:[%s4085_s24 + $0xf0] sm:$0xff] %v3643_v7  ;;  %3025 = vst [vmem:[%s4085_s24 + $0x78] sm:$0xff] %v3628_v9  ;;  %v2141_v62 = vpack.c.bf16 %v2107_v10, %v2075_v4  ;;  %v3644_v11 = vpack.c.bf16 %v2107_v10, %v2106_v6  ;;  %2764 = vmatprep.subr.bf16.mxu0 %v2139_v51 }
 0x215   : > { %2765 = vmatpush1.bf16.msra.mxu0 %v2138_v17 }
 0x216   : > { %3041 = vst [vmem:[%s4085_s24 + $0xf8] sm:$0xff] %v3644_v11  ;;  %2807 = vmatprep.subr.bf16.mxu1 %v2141_v62 }
 0x217   : > { %2808 = vmatpush1.bf16.msra.mxu1 %v2140_v8 }
 0x218   : > { %3542 = vmatmul.mubr.msk.bf16.vlgmr.msra.gmra.mrb[92].mxu0 %vm1352_vm2, %v4095_v38 }
 0x21a   : > { %3543 = vmatmul.mubr.msk.bf16.vlgmr.msra.gmra.mrb[92].mxu1 %vm1352_vm2, %v4095_v38 }
 0x2b3   : > { %v2196_v13 = vpop.f32.mrb[64].mxu0 }
 0x2b4   : > { %v2197_v3 = vadd.f32 %v2196_v13, %v4226_v12  ;;  %v2198_v16 = vpop.f32.mrb[65].mxu0 }
 0x2b5   : > { %v2199_v18 = vadd.f32 %v2198_v16, %v4226_v12  ;;  %v2200_v19 = vpop.f32.mrb[66].mxu0  ;;  %v2239_v20 = vpop.f32.mrb[64].mxu1 }
 0x2b6   : > { %v2201_v21 = vadd.f32 %v2200_v19, %v4228_v14  ;;  %v2240_v22 = vadd.f32 %v2239_v20, %v4226_v12  ;;  %v2202_v38 = vpop.f32.mrb[67].mxu0  ;;  %v2241_v23 = vpop.f32.mrb[65].mxu1 }
 0x2b7   : > { %v3645_v24 = vpack.c.bf16 %v2199_v18, %v2197_v3  ;;  %v2203_v25 = vadd.f32 %v2202_v38, %v4228_v14  ;;  %v2242_v26 = vadd.f32 %v2241_v23, %v4226_v12  ;;  %v2243_v27 = vpop.f32.mrb[66].mxu1 }
 0x2b8   : > { %v2244_v28 = vadd.f32 %v2243_v27, %v4228_v14  ;;  %v2245_v29 = vpop.f32.mrb[67].mxu1 }
 0x2b9   : > { %3234 = vst [vmem:[%s4085_s24 + $0x100] sm:$0xff] %v3645_v24  ;;  %v3661_v30 = vpack.c.bf16 %v2203_v25, %v2201_v21  ;;  %v3646_v31 = vpack.c.bf16 %v2242_v26, %v2240_v22  ;;  %v2246_v32 = vadd.f32 %v2245_v29, %v4228_v14 }
 0x2bb   : > { %3250 = vst [vmem:[%s4085_s24 + $0x180] sm:$0xff] %v3661_v30  ;;  %3235 = vst [vmem:[%s4085_s24 + $0x108] sm:$0xff] %v3646_v31  ;;  %v3662_v33 = vpack.c.bf16 %v2246_v32, %v2244_v28  ;;  %v2282_v34 = vpop.f32.mrb[68].mxu0 }
 0x2bc   : > { %v2283_v35 = vadd.f32 %v2282_v34, %v4226_v12  ;;  %v2284_v36 = vpop.f32.mrb[69].mxu0 }
 0x2bd   : > { %3251 = vst [vmem:[%s4085_s24 + $0x188] sm:$0xff] %v3662_v33  ;;  %v2285_v37 = vadd.f32 %v2284_v36, %v4226_v12  ;;  %v2286_v39 = vpop.f32.mrb[70].mxu0  ;;  %v2325_v40 = vpop.f32.mrb[68].mxu1 }
 0x2be   : > { %v2287_v41 = vadd.f32 %v2286_v39, %v4228_v14  ;;  %v2326_v42 = vadd.f32 %v2325_v40, %v4226_v12  ;;  %v2288_v43 = vpop.f32.mrb[71].mxu0  ;;  %v2327_v44 = vpop.f32.mrb[69].mxu1 }
 0x2bf   : > { %v3647_v45 = vpack.c.bf16 %v2285_v37, %v2283_v35  ;;  %v2289_v46 = vadd.f32 %v2288_v43, %v4228_v14  ;;  %v2328_v47 = vadd.f32 %v2327_v44, %v4226_v12  ;;  %v2329_v48 = vpop.f32.mrb[70].mxu1 }
 0x2c0   : > { %v2330_v49 = vadd.f32 %v2329_v48, %v4228_v14  ;;  %v2331_v50 = vpop.f32.mrb[71].mxu1 }
 0x2c1   : > { %3236 = vst [vmem:[%s4085_s24 + $0x110] sm:$0xff] %v3647_v45  ;;  %v3663_v52 = vpack.c.bf16 %v2289_v46, %v2287_v41  ;;  %v3648_v53 = vpack.c.bf16 %v2328_v47, %v2326_v42  ;;  %v2332_v54 = vadd.f32 %v2331_v50, %v4228_v14 }
 0x2c3   : > { %3252 = vst [vmem:[%s4085_s24 + $0x190] sm:$0xff] %v3663_v52  ;;  %3237 = vst [vmem:[%s4085_s24 + $0x118] sm:$0xff] %v3648_v53  ;;  %v3664_v55 = vpack.c.bf16 %v2332_v54, %v2330_v49  ;;  %v2368_v56 = vpop.f32.mrb[72].mxu0 }
 0x2c4   : > { %v2369_v15 = vadd.f32 %v2368_v56, %v4226_v12  ;;  %v2370_v57 = vpop.f32.mrb[73].mxu0 }
 0x2c5   : > { %3253 = vst [vmem:[%s4085_s24 + $0x198] sm:$0xff] %v3664_v55  ;;  %v2371_v58 = vadd.f32 %v2370_v57, %v4226_v12  ;;  %v2372_v59 = vpop.f32.mrb[74].mxu0  ;;  %v2411_v60 = vpop.f32.mrb[72].mxu1 }
 0x2c6   : > { %v2373_v61 = vadd.f32 %v2372_v59, %v4228_v14  ;;  %v2412_v63 = vadd.f32 %v2411_v60, %v4226_v12  ;;  %v2374_v0 = vpop.f32.mrb[75].mxu0  ;;  %v2413_v1 = vpop.f32.mrb[73].mxu1 }
 0x2c7   : > { %v3649_v2 = vpack.c.bf16 %v2371_v58, %v2369_v15  ;;  %v2375_v4 = vadd.f32 %v2374_v0, %v4228_v14  ;;  %v2414_v5 = vadd.f32 %v2413_v1, %v4226_v12  ;;  %v2415_v17 = vpop.f32.mrb[74].mxu1 }
 0x2c8   : > { %v2416_v6 = vadd.f32 %v2415_v17, %v4228_v14  ;;  %v2417_v51 = vpop.f32.mrb[75].mxu1 }
 0x2c9   : > { %3238 = vst [vmem:[%s4085_s24 + $0x120] sm:$0xff] %v3649_v2  ;;  %v3665_v7 = vpack.c.bf16 %v2375_v4, %v2373_v61  ;;  %v3650_v9 = vpack.c.bf16 %v2414_v5, %v2412_v63  ;;  %v2418_v10 = vadd.f32 %v2417_v51, %v4228_v14 }
 0x2cb   : > { %3254 = vst [vmem:[%s4085_s24 + $0x1a0] sm:$0xff] %v3665_v7  ;;  %3239 = vst [vmem:[%s4085_s24 + $0x128] sm:$0xff] %v3650_v9  ;;  %v3666_v8 = vpack.c.bf16 %v2418_v10, %v2416_v6  ;;  %v2454_v62 = vpop.f32.mrb[76].mxu0 }
 0x2cc   : > { %v2455_v11 = vadd.f32 %v2454_v62, %v4226_v12  ;;  %v2456_v13 = vpop.f32.mrb[77].mxu0 }
 0x2cd   : > { %3255 = vst [vmem:[%s4085_s24 + $0x1a8] sm:$0xff] %v3666_v8  ;;  %v2457_v3 = vadd.f32 %v2456_v13, %v4226_v12  ;;  %v2458_v16 = vpop.f32.mrb[78].mxu0  ;;  %v2497_v18 = vpop.f32.mrb[76].mxu1 }
 0x2ce   : > { %v2459_v19 = vadd.f32 %v2458_v16, %v4228_v14  ;;  %v2498_v20 = vadd.f32 %v2497_v18, %v4226_v12  ;;  %v2460_v21 = vpop.f32.mrb[79].mxu0  ;;  %v2499_v22 = vpop.f32.mrb[77].mxu1 }
 0x2cf   : > { %v3651_v38 = vpack.c.bf16 %v2457_v3, %v2455_v11  ;;  %v2461_v23 = vadd.f32 %v2460_v21, %v4228_v14  ;;  %v2500_v24 = vadd.f32 %v2499_v22, %v4226_v12  ;;  %v2501_v25 = vpop.f32.mrb[78].mxu1 }
 0x2d0   : > { %v2502_v26 = vadd.f32 %v2501_v25, %v4228_v14  ;;  %v2503_v27 = vpop.f32.mrb[79].mxu1 }
 0x2d1   : > { %3240 = vst [vmem:[%s4085_s24 + $0x130] sm:$0xff] %v3651_v38  ;;  %v3667_v28 = vpack.c.bf16 %v2461_v23, %v2459_v19  ;;  %v3652_v29 = vpack.c.bf16 %v2500_v24, %v2498_v20  ;;  %v2504_v30 = vadd.f32 %v2503_v27, %v4228_v14 }
 0x2d3   : > { %3256 = vst [vmem:[%s4085_s24 + $0x1b0] sm:$0xff] %v3667_v28  ;;  %3241 = vst [vmem:[%s4085_s24 + $0x138] sm:$0xff] %v3652_v29  ;;  %v3668_v31 = vpack.c.bf16 %v2504_v30, %v2502_v26  ;;  %v2540_v32 = vpop.f32.mrb[80].mxu0 }
 0x2d4   : > { %v2541_v33 = vadd.f32 %v2540_v32, %v4226_v12  ;;  %v2542_v34 = vpop.f32.mrb[81].mxu0 }
 0x2d5   : > { %3257 = vst [vmem:[%s4085_s24 + $0x1b8] sm:$0xff] %v3668_v31  ;;  %v2543_v35 = vadd.f32 %v2542_v34, %v4226_v12  ;;  %v2544_v36 = vpop.f32.mrb[82].mxu0  ;;  %v2583_v37 = vpop.f32.mrb[80].mxu1 }
 0x2d6   : > { %v2545_v39 = vadd.f32 %v2544_v36, %v4228_v14  ;;  %v2584_v40 = vadd.f32 %v2583_v37, %v4226_v12  ;;  %v2546_v41 = vpop.f32.mrb[83].mxu0  ;;  %v2585_v42 = vpop.f32.mrb[81].mxu1 }
 0x2d7   : > { %v3653_v43 = vpack.c.bf16 %v2543_v35, %v2541_v33  ;;  %v2547_v44 = vadd.f32 %v2546_v41, %v4228_v14  ;;  %v2586_v45 = vadd.f32 %v2585_v42, %v4226_v12  ;;  %v2587_v46 = vpop.f32.mrb[82].mxu1 }
 0x2d8   : > { %v2588_v47 = vadd.f32 %v2587_v46, %v4228_v14  ;;  %v2589_v48 = vpop.f32.mrb[83].mxu1 }
 0x2d9   : > { %3242 = vst [vmem:[%s4085_s24 + $0x140] sm:$0xff] %v3653_v43  ;;  %v3669_v49 = vpack.c.bf16 %v2547_v44, %v2545_v39  ;;  %v3654_v50 = vpack.c.bf16 %v2586_v45, %v2584_v40  ;;  %v2590_v52 = vadd.f32 %v2589_v48, %v4228_v14 }
 0x2db   : > { %3258 = vst [vmem:[%s4085_s24 + $0x1c0] sm:$0xff] %v3669_v49  ;;  %3243 = vst [vmem:[%s4085_s24 + $0x148] sm:$0xff] %v3654_v50  ;;  %v3670_v53 = vpack.c.bf16 %v2590_v52, %v2588_v47  ;;  %v2626_v54 = vpop.f32.mrb[84].mxu0  ;;  %v3292_v52 = vld [vmem:[%s4085_s24 + $0x10] sm:$0xff] (%p3808_p4) }
 0x2dc   : > { %v2627_v55 = vadd.f32 %v2626_v54, %v4226_v12  ;;  %v2628_v56 = vpop.f32.mrb[85].mxu0  ;;  %v3296_v54 = vld [vmem:[%s4085_s24 + $0x20] sm:$0xff] (%p3808_p4)  ;;  %3293 = vst [vmem:[%s4335_s21 + $0x10] sm:$0xff] (%p3808_p4), %v3292_v52 }
 0x2dd   : > { %3259 = vst [vmem:[%s4085_s24 + $0x1c8] sm:$0xff] %v3670_v53  ;;  %v2629_v15 = vadd.f32 %v2628_v56, %v4226_v12  ;;  %v2630_v57 = vpop.f32.mrb[86].mxu0  ;;  %v2669_v58 = vpop.f32.mrb[84].mxu1  ;;  %v3294_v53 = vld [vmem:[%s4085_s24 + $0x18] sm:$0xff] (%p3808_p4)  ;;  %3297 = vst [vmem:[%s4335_s21 + $0x20] sm:$0xff] (%p3808_p4), %v3296_v54  ;;  %v3300_v56 = vld [vmem:[%s4085_s24 + $0x30] sm:$0xff] (%p3808_p4) }
 0x2de   : > { %v2631_v59 = vadd.f32 %v2630_v57, %v4228_v14  ;;  %v2670_v60 = vadd.f32 %v2669_v58, %v4226_v12  ;;  %v2632_v61 = vpop.f32.mrb[87].mxu0  ;;  %v2671_v63 = vpop.f32.mrb[85].mxu1  ;;  %3295 = vst [vmem:[%s4335_s21 + $0x18] sm:$0xff] (%p3808_p4), %v3294_v53  ;;  %v3304_v57 = vld [vmem:[%s4085_s24 + $0x40] sm:$0xff] (%p3808_p4)  ;;  %3301 = vst [vmem:[%s4335_s21 + $0x30] sm:$0xff] (%p3808_p4), %v3300_v56  ;;  %v3306_v58 = vld [vmem:[%s4085_s24 + $0x48] sm:$0xff] (%p3808_p4) }
 0x2df   : > { %v3655_v0 = vpack.c.bf16 %v2629_v15, %v2627_v55  ;;  %v2633_v1 = vadd.f32 %v2632_v61, %v4228_v14  ;;  %v2672_v2 = vadd.f32 %v2671_v63, %v4226_v12  ;;  %v2673_v4 = vpop.f32.mrb[86].mxu1  ;;  %v3298_v55 = vld [vmem:[%s4085_s24 + $0x28] sm:$0xff] (%p3808_p4)  ;;  %v3302_v15 = vld [vmem:[%s4085_s24 + $0x38] sm:$0xff] (%p3808_p4)  ;;  %3305 = vst [vmem:[%s4335_s21 + $0x40] sm:$0xff] (%p3808_p4), %v3304_v57  ;;  %3307 = vst [vmem:[%s4335_s21 + $0x48] sm:$0xff] (%p3808_p4), %v3306_v58 }
 0x2e0   : > { %v2674_v5 = vadd.f32 %v2673_v4, %v4228_v14  ;;  %v2675_v17 = vpop.f32.mrb[87].mxu1  ;;  %3299 = vst [vmem:[%s4335_s21 + $0x28] sm:$0xff] (%p3808_p4), %v3298_v55  ;;  %3303 = vst [vmem:[%s4335_s21 + $0x38] sm:$0xff] (%p3808_p4), %v3302_v15  ;;  %v3312_v61 = vld [vmem:[%s4085_s24 + $0x60] sm:$0xff] (%p3808_p4)  ;;  %v3314_v63 = vld [vmem:[%s4085_s24 + $0x68] sm:$0xff] (%p3808_p4) }
 0x2e1   : > { %3244 = vst [vmem:[%s4085_s24 + $0x150] sm:$0xff] %v3655_v0  ;;  %v3671_v6 = vpack.c.bf16 %v2633_v1, %v2631_v59  ;;  %v3656_v51 = vpack.c.bf16 %v2672_v2, %v2670_v60  ;;  %v2676_v7 = vadd.f32 %v2675_v17, %v4228_v14  ;;  %v3308_v59 = vld [vmem:[%s4085_s24 + $0x50] sm:$0xff] (%p3808_p4)  ;;  %v3310_v60 = vld [vmem:[%s4085_s24 + $0x58] sm:$0xff] (%p3808_p4)  ;;  %3313 = vst [vmem:[%s4335_s21 + $0x60] sm:$0xff] (%p3808_p4), %v3312_v61 }
 0x2e2   : > { %3309 = vst [vmem:[%s4335_s21 + $0x50] sm:$0xff] (%p3808_p4), %v3308_v59  ;;  %3311 = vst [vmem:[%s4335_s21 + $0x58] sm:$0xff] (%p3808_p4), %v3310_v60  ;;  %v3316_v0 = vld [vmem:[%s4085_s24 + $0x70] sm:$0xff] (%p3808_p4)  ;;  %v3318_v1 = vld [vmem:[%s4085_s24 + $0x78] sm:$0xff] (%p3808_p4) }
 0x2e3   : > { %3260 = vst [vmem:[%s4085_s24 + $0x1d0] sm:$0xff] %v3671_v6  ;;  %3245 = vst [vmem:[%s4085_s24 + $0x158] sm:$0xff] %v3656_v51  ;;  %v3672_v9 = vpack.c.bf16 %v2676_v7, %v2674_v5  ;;  %v2712_v10 = vpop.f32.mrb[88].mxu0  ;;  %v3320_v2 = vld [vmem:[%s4085_s24 + $0x80] sm:$0xff] (%p3808_p4)  ;;  %v3322_v4 = vld [vmem:[%s4085_s24 + $0x88] sm:$0xff] (%p3808_p4) }
 0x2e4   : > { %v2713_v8 = vadd.f32 %v2712_v10, %v4226_v12  ;;  %v2714_v62 = vpop.f32.mrb[89].mxu0  ;;  %3315 = vst [vmem:[%s4335_s21 + $0x68] sm:$0xff] (%p3808_p4), %v3314_v63  ;;  %3317 = vst [vmem:[%s4335_s21 + $0x70] sm:$0xff] (%p3808_p4), %v3316_v0  ;;  %v3324_v5 = vld [vmem:[%s4085_s24 + $0x90] sm:$0xff] (%p3808_p4)  ;;  %v3326_v17 = vld [vmem:[%s4085_s24 + $0x98] sm:$0xff] (%p3808_p4) }
 0x2e5   : > { %3261 = vst [vmem:[%s4085_s24 + $0x1d8] sm:$0xff] %v3672_v9  ;;  %v2715_v11 = vadd.f32 %v2714_v62, %v4226_v12  ;;  %v2716_v13 = vpop.f32.mrb[90].mxu0  ;;  %v2755_v3 = vpop.f32.mrb[88].mxu1  ;;  %3319 = vst [vmem:[%s4335_s21 + $0x78] sm:$0xff] (%p3808_p4), %v3318_v1  ;;  %v3328_v6 = vld [vmem:[%s4085_s24 + $0xa0] sm:$0xff] (%p3808_p4)  ;;  %v3330_v51 = vld [vmem:[%s4085_s24 + $0xa8] sm:$0xff] (%p3808_p4) }
 0x2e6   : > { %v2717_v16 = vadd.f32 %v2716_v13, %v4228_v14  ;;  %v2756_v18 = vadd.f32 %v2755_v3, %v4226_v12  ;;  %v2718_v19 = vpop.f32.mrb[91].mxu0  ;;  %v2757_v20 = vpop.f32.mrb[89].mxu1  ;;  %3321 = vst [vmem:[%s4335_s21 + $0x100] sm:$0xff] (%p3808_p4), %v3320_v2  ;;  %3323 = vst [vmem:[%s4335_s21 + $0x108] sm:$0xff] (%p3808_p4), %v3322_v4  ;;  %v3332_v7 = vld [vmem:[%s4085_s24 + $0xb0] sm:$0xff] (%p3808_p4)  ;;  %v3334_v9 = vld [vmem:[%s4085_s24 + $0xb8] sm:$0xff] (%p3808_p4) }
 0x2e7   : > { %v3657_v21 = vpack.c.bf16 %v2715_v11, %v2713_v8  ;;  %v2719_v22 = vadd.f32 %v2718_v19, %v4228_v14  ;;  %v2758_v38 = vadd.f32 %v2757_v20, %v4226_v12  ;;  %v2759_v23 = vpop.f32.mrb[90].mxu1  ;;  %3325 = vst [vmem:[%s4335_s21 + $0x110] sm:$0xff] (%p3808_p4), %v3324_v5  ;;  %3327 = vst [vmem:[%s4335_s21 + $0x118] sm:$0xff] (%p3808_p4), %v3326_v17  ;;  %v3336_v10 = vld [vmem:[%s4085_s24 + $0xc0] sm:$0xff] (%p3808_p4)  ;;  %v3338_v8 = vld [vmem:[%s4085_s24 + $0xc8] sm:$0xff] (%p3808_p4) }
 0x2e8   : > { %v2760_v24 = vadd.f32 %v2759_v23, %v4228_v14  ;;  %v2761_v25 = vpop.f32.mrb[91].mxu1  ;;  %3329 = vst [vmem:[%s4335_s21 + $0x120] sm:$0xff] (%p3808_p4), %v3328_v6  ;;  %3331 = vst [vmem:[%s4335_s21 + $0x128] sm:$0xff] (%p3808_p4), %v3330_v51  ;;  %v3340_v62 = vld [vmem:[%s4085_s24 + $0xd0] sm:$0xff] (%p3808_p4)  ;;  %v3342_v11 = vld [vmem:[%s4085_s24 + $0xd8] sm:$0xff] (%p3808_p4) }
 0x2e9   : > { %3246 = vst [vmem:[%s4085_s24 + $0x160] sm:$0xff] %v3657_v21  ;;  %v3673_v26 = vpack.c.bf16 %v2719_v22, %v2717_v16  ;;  %v3658_v27 = vpack.c.bf16 %v2758_v38, %v2756_v18  ;;  %v2762_v28 = vadd.f32 %v2761_v25, %v4228_v14  ;;  %3333 = vst [vmem:[%s4335_s21 + $0x130] sm:$0xff] (%p3808_p4), %v3332_v7  ;;  %v3344_v13 = vld [vmem:[%s4085_s24 + $0xe0] sm:$0xff] (%p3808_p4)  ;;  %v3346_v3 = vld [vmem:[%s4085_s24 + $0xe8] sm:$0xff] (%p3808_p4) }
 0x2ea   : > { %3335 = vst [vmem:[%s4335_s21 + $0x138] sm:$0xff] (%p3808_p4), %v3334_v9  ;;  %3337 = vst [vmem:[%s4335_s21 + $0x140] sm:$0xff] (%p3808_p4), %v3336_v10  ;;  %v3348_v16 = vld [vmem:[%s4085_s24 + $0xf0] sm:$0xff] (%p3808_p4)  ;;  %v3350_v18 = vld [vmem:[%s4085_s24 + $0xf8] sm:$0xff] (%p3808_p4) }
 0x2eb   : > { %3262 = vst [vmem:[%s4085_s24 + $0x1e0] sm:$0xff] %v3673_v26  ;;  %3247 = vst [vmem:[%s4085_s24 + $0x168] sm:$0xff] %v3658_v27  ;;  %v3674_v29 = vpack.c.bf16 %v2762_v28, %v2760_v24  ;;  %v2798_v30 = vpop.f32.mrb[92].mxu0  ;;  %v3352_v19 = vld [vmem:[%s4085_s24 + $0x100] sm:$0xff] (%p3808_p4)  ;;  %v3354_v20 = vld [vmem:[%s4085_s24 + $0x108] sm:$0xff] (%p3808_p4) }
 0x2ec   : > { %v2799_v31 = vadd.f32 %v2798_v30, %v4226_v12  ;;  %v2800_v32 = vpop.f32.mrb[93].mxu0  ;;  %3339 = vst [vmem:[%s4335_s21 + $0x148] sm:$0xff] (%p3808_p4), %v3338_v8  ;;  %3341 = vst [vmem:[%s4335_s21 + $0x150] sm:$0xff] (%p3808_p4), %v3340_v62  ;;  %v3356_v21 = vld [vmem:[%s4085_s24 + $0x110] sm:$0xff] (%p3808_p4)  ;;  %v3358_v22 = vld [vmem:[%s4085_s24 + $0x118] sm:$0xff] (%p3808_p4) }
 0x2ed   : > { %3263 = vst [vmem:[%s4085_s24 + $0x1e8] sm:$0xff] %v3674_v29  ;;  %v2801_v33 = vadd.f32 %v2800_v32, %v4226_v12  ;;  %v2802_v34 = vpop.f32.mrb[94].mxu0  ;;  %v2841_v35 = vpop.f32.mrb[92].mxu1  ;;  %3343 = vst [vmem:[%s4335_s21 + $0x158] sm:$0xff] (%p3808_p4), %v3342_v11  ;;  %v3360_v38 = vld [vmem:[%s4085_s24 + $0x120] sm:$0xff] (%p3808_p4)  ;;  %v3362_v23 = vld [vmem:[%s4085_s24 + $0x128] sm:$0xff] (%p3808_p4) }
 0x2ee   : > { %v2803_v36 = vadd.f32 %v2802_v34, %v4228_v14  ;;  %v2842_v37 = vadd.f32 %v2841_v35, %v4226_v12  ;;  %v2804_v39 = vpop.f32.mrb[95].mxu0  ;;  %v2843_v40 = vpop.f32.mrb[93].mxu1  ;;  %3345 = vst [vmem:[%s4335_s21 + $0x160] sm:$0xff] (%p3808_p4), %v3344_v13  ;;  %3347 = vst [vmem:[%s4335_s21 + $0x168] sm:$0xff] (%p3808_p4), %v3346_v3  ;;  %v3364_v24 = vld [vmem:[%s4085_s24 + $0x130] sm:$0xff] (%p3808_p4)  ;;  %v3366_v25 = vld [vmem:[%s4085_s24 + $0x138] sm:$0xff] (%p3808_p4) }
 0x2ef   : > { %v3659_v41 = vpack.c.bf16 %v2801_v33, %v2799_v31  ;;  %v2805_v42 = vadd.f32 %v2804_v39, %v4228_v14  ;;  %v2844_v43 = vadd.f32 %v2843_v40, %v4226_v12  ;;  %v2845_v44 = vpop.f32.mrb[94].mxu1  ;;  %3272 = sbr.rel (!%p3808_p4) target bundleno = 771 (0x303), region = 52  ;;  %v3288_v12 = vld [vmem:[%s4085_s24] sm:$0xff] (%p3808_p4)  ;;  %3349 = vst [vmem:[%s4335_s21 + $0x170] sm:$0xff] (%p3808_p4), %v3348_v16  ;;  %3351 = vst [vmem:[%s4335_s21 + $0x178] sm:$0xff] (%p3808_p4), %v3350_v18  ;;  %v3370_v27 = vld [vmem:[%s4085_s24 + $0x148] sm:$0xff] (%p3808_p4) }
 0x2f0   : > { %v2846_v45 = vadd.f32 %v2845_v44, %v4228_v14  ;;  %v2847_v46 = vpop.f32.mrb[95].mxu1  ;;  %3289 = vst [vmem:[%s4335_s21] sm:$0xff] (%p3808_p4), %v3288_v12  ;;  %3353 = vst [vmem:[%s4335_s21 + $0x200] sm:$0xff] (%p3808_p4), %v3352_v19  ;;  %v3368_v26 = vld [vmem:[%s4085_s24 + $0x140] sm:$0xff] (%p3808_p4)  ;;  %v3372_v28 = vld [vmem:[%s4085_s24 + $0x150] sm:$0xff] (%p3808_p4) }
 0x2f1   : > { %3248 = vst [vmem:[%s4085_s24 + $0x170] sm:$0xff] %v3659_v41  ;;  %v3675_v47 = vpack.c.bf16 %v2805_v42, %v2803_v36  ;;  %v3660_v48 = vpack.c.bf16 %v2844_v43, %v2842_v37  ;;  %v2848_v49 = vadd.f32 %v2847_v46, %v4228_v14  ;;  %v3290_v14 = vld [vmem:[%s4085_s24 + $0x8] sm:$0xff] (%p3808_p4)  ;;  %3355 = vst [vmem:[%s4335_s21 + $0x208] sm:$0xff] (%p3808_p4), %v3354_v20  ;;  %v3374_v29 = vld [vmem:[%s4085_s24 + $0x158] sm:$0xff] (%p3808_p4) }
 0x2f2   : > { %3291 = vst [vmem:[%s4335_s21 + $0x8] sm:$0xff] (%p3808_p4), %v3290_v14  ;;  %3357 = vst [vmem:[%s4335_s21 + $0x210] sm:$0xff] (%p3808_p4), %v3356_v21  ;;  %v3376_v30 = vld [vmem:[%s4085_s24 + $0x160] sm:$0xff] (%p3808_p4)  ;;  %v3378_v31 = vld [vmem:[%s4085_s24 + $0x168] sm:$0xff] (%p3808_p4) }
 0x2f3   : > { %3264 = vst [vmem:[%s4085_s24 + $0x1f0] sm:$0xff] %v3675_v47  ;;  %3249 = vst [vmem:[%s4085_s24 + $0x178] sm:$0xff] %v3660_v48  ;;  %v3676_v50 = vpack.c.bf16 %v2848_v49, %v2846_v45  ;;  %v3384_v34 = vld [vmem:[%s4085_s24 + $0x180] sm:$0xff] (%p3808_p4)  ;;  %v3386_v35 = vld [vmem:[%s4085_s24 + $0x188] sm:$0xff] (%p3808_p4) }
 0x2f4   : > { %3359 = vst [vmem:[%s4335_s21 + $0x218] sm:$0xff] (%p3808_p4), %v3358_v22  ;;  %3361 = vst [vmem:[%s4335_s21 + $0x220] sm:$0xff] (%p3808_p4), %v3360_v38  ;;  %v3388_v36 = vld [vmem:[%s4085_s24 + $0x190] sm:$0xff] (%p3808_p4)  ;;  %v3390_v37 = vld [vmem:[%s4085_s24 + $0x198] sm:$0xff] (%p3808_p4) }
 0x2f5   : > { %3265 = vst [vmem:[%s4085_s24 + $0x1f8] sm:$0xff] %v3676_v50  ;;  %3363 = vst [vmem:[%s4335_s21 + $0x228] sm:$0xff] (%p3808_p4), %v3362_v23  ;;  %v3392_v39 = vld [vmem:[%s4085_s24 + $0x1a0] sm:$0xff] (%p3808_p4)  ;;  %v3394_v40 = vld [vmem:[%s4085_s24 + $0x1a8] sm:$0xff] (%p3808_p4) }
 0x2f6   : > { %3365 = vst [vmem:[%s4335_s21 + $0x230] sm:$0xff] %v3364_v24  ;;  %3367 = vst [vmem:[%s4335_s21 + $0x238] sm:$0xff] %v3366_v25  ;;  %v3396_v41 = vld [vmem:[%s4085_s24 + $0x1b0] sm:$0xff]  ;;  %v3398_v42 = vld [vmem:[%s4085_s24 + $0x1b8] sm:$0xff] }
 0x2f7   : > { %3369 = vst [vmem:[%s4335_s21 + $0x240] sm:$0xff] %v3368_v26  ;;  %3371 = vst [vmem:[%s4335_s21 + $0x248] sm:$0xff] %v3370_v27  ;;  %v3400_v43 = vld [vmem:[%s4085_s24 + $0x1c0] sm:$0xff]  ;;  %v3402_v44 = vld [vmem:[%s4085_s24 + $0x1c8] sm:$0xff] }
 0x2f8   : > { %3373 = vst [vmem:[%s4335_s21 + $0x250] sm:$0xff] %v3372_v28  ;;  %3375 = vst [vmem:[%s4335_s21 + $0x258] sm:$0xff] %v3374_v29  ;;  %v3380_v32 = vld [vmem:[%s4085_s24 + $0x170] sm:$0xff]  ;;  %v3406_v46 = vld [vmem:[%s4085_s24 + $0x1d8] sm:$0xff] }
 0x2f9   : > { %3377 = vst [vmem:[%s4335_s21 + $0x260] sm:$0xff] %v3376_v30  ;;  %3379 = vst [vmem:[%s4335_s21 + $0x268] sm:$0xff] %v3378_v31  ;;  %v3404_v45 = vld [vmem:[%s4085_s24 + $0x1d0] sm:$0xff]  ;;  %v3408_v47 = vld [vmem:[%s4085_s24 + $0x1e0] sm:$0xff] }
 0x2fa   : > { %v3382_v33 = vld [vmem:[%s4085_s24 + $0x178] sm:$0xff]  ;;  %3381 = vst [vmem:[%s4335_s21 + $0x270] sm:$0xff] %v3380_v32  ;;  %3385 = vst [vmem:[%s4335_s21 + $0x300] sm:$0xff] %v3384_v34  ;;  %v3410_v48 = vld [vmem:[%s4085_s24 + $0x1e8] sm:$0xff] }
 0x2fb   : > { %3383 = vst [vmem:[%s4335_s21 + $0x278] sm:$0xff] %v3382_v33  ;;  %3387 = vst [vmem:[%s4335_s21 + $0x308] sm:$0xff] %v3386_v35  ;;  %v3412_v49 = vld [vmem:[%s4085_s24 + $0x1f0] sm:$0xff] }
 0x2fc   : > { %3389 = vst [vmem:[%s4335_s21 + $0x310] sm:$0xff] %v3388_v36  ;;  %3391 = vst [vmem:[%s4335_s21 + $0x318] sm:$0xff] %v3390_v37  ;;  %v3414_v50 = vld [vmem:[%s4085_s24 + $0x1f8] sm:$0xff] }
 0x2fd   : > { %3393 = vst [vmem:[%s4335_s21 + $0x320] sm:$0xff] %v3392_v39  ;;  %3395 = vst [vmem:[%s4335_s21 + $0x328] sm:$0xff] %v3394_v40 }
 0x2fe   : > { %3397 = vst [vmem:[%s4335_s21 + $0x330] sm:$0xff] %v3396_v41  ;;  %3399 = vst [vmem:[%s4335_s21 + $0x338] sm:$0xff] %v3398_v42 }
 0x2ff   : > { %3401 = vst [vmem:[%s4335_s21 + $0x340] sm:$0xff] %v3400_v43  ;;  %3403 = vst [vmem:[%s4335_s21 + $0x348] sm:$0xff] %v3402_v44 }
 0x300   : > { %3405 = vst [vmem:[%s4335_s21 + $0x350] sm:$0xff] %v3404_v45  ;;  %3407 = vst [vmem:[%s4335_s21 + $0x358] sm:$0xff] %v3406_v46 }
 0x301   : > { %3409 = vst [vmem:[%s4335_s21 + $0x360] sm:$0xff] %v3408_v47  ;;  %3411 = vst [vmem:[%s4335_s21 + $0x368] sm:$0xff] %v3410_v48 }
 0x302   : > { %3413 = vst [vmem:[%s4335_s21 + $0x370] sm:$0xff] %v3412_v49  ;;  %3415 = vst [vmem:[%s4335_s21 + $0x378] sm:$0xff] %v3414_v50 }
 0x303 PF: > { %p14_p8 = scmp.ge.s32.totalorder %s3798_s28, 4   ;;  %s4481_s24 = smov %s3735_s25 }
 0x304   : > { %s4482_s25 = smov %s3806_s8  ;;  %s4483_s26 = smov %s3798_s28 }
 0x305   :  { %16 = sbr.rel (!%p14_p8) target bundleno = 2 (0x2), region = 101 }

</bundles_post_ra>
